<compile_context>
chip_gen: v6e
topology: v6e:2x2x1
jax: 0.10.0
libtpu: 0.0.40
codegen_flags: <defaults>
</compile_context>

<pallas_src>
import jax
import jax.numpy as jnp
from jax import lax
from jax.experimental import pallas as pl
from jax.experimental.pallas import tpu as pltpu

# ---------------- module hyper-parameters (small, consistent with NATLayer) -----
DIM = 32          # embedding dim C
HEADS = 4         # num_heads
HEAD_DIM = DIM // HEADS
KS = 7            # kernel_size of NeighborhoodAttention1D
MLP_RATIO = 4.0
HIDDEN = int(DIM * MLP_RATIO)
EPS = 1e-5
SCALE = HEAD_DIM ** -0.5

B = 2             # batch
L = 16            # sequence length (>= kernel_size)


# ---------------- GELU (tanh form -> EUP) ----------------------------------------
def _gelu(x):
    # nn.GELU(approximate='tanh'); jnp.tanh lowers to the EUP (its own VLIW slot).
    c = 0.7978845608028654  # sqrt(2/pi)
    return 0.5 * x * (1.0 + jnp.tanh(c * (x + 0.044715 * (x * x * x))))


def _layernorm(v, g, b):
    mu = jnp.mean(v, axis=-1, keepdims=True)
    var = jnp.mean((v - mu) ** 2, axis=-1, keepdims=True)
    return (v - mu) * lax.rsqrt(var + EPS) * g + b


# ---------------------------- the Pallas kernel ---------------------------------
def nat_layer_kernel(x_ref, g1_ref, b1_ref, wqkv_ref, bqkv_ref, bm_ref,
                     wproj_ref, bproj_ref, g2_ref, b2_ref,
                     w1_ref, bb1_ref, w2_ref, bb2_ref, out_ref):
    x = x_ref[...]                                   # (B*L, C) f32, all tokens at once
    shortcut = x

    # ---- norm1 + fused qkv projection (single M = B*L matmul) ----
    xn = _layernorm(x, g1_ref[...], b1_ref[...])
    qkv = jnp.dot(xn, wqkv_ref[...], preferred_element_type=jnp.float32) + bqkv_ref[...]

    # ---- neighborhood attention ----
    # Heads are unrolled; each head's output is contracted straight into W_proj rows
    # and accumulated (no concatenate, no materialized attn_out).  The neighborhood
    # window, relative-position bias and batch block-diagonality all live in the
    # precomputed additive mask bm_ref (-1e30 outside).
    wproj = wproj_ref[...]
    proj_acc = None
    for h in range(HEADS):
        qh = qkv[:, h * HEAD_DIM:(h + 1) * HEAD_DIM] * SCALE
        kh = qkv[:, DIM + h * HEAD_DIM: DIM + (h + 1) * HEAD_DIM]
        vh = qkv[:, 2 * DIM + h * HEAD_DIM: 2 * DIM + (h + 1) * HEAD_DIM]
        # q @ k^T without an explicit transpose (NT matmul on the MXU).
        s = lax.dot_general(qh, kh, (((1,), (1,)), ((), ())),
                            preferred_element_type=jnp.float32) + bm_ref[h]
        s = s - jnp.max(s, axis=-1, keepdims=True)
        p = jnp.exp(s)                                                   # EUP
        p = p * pl.reciprocal(jnp.sum(p, axis=-1, keepdims=True), approx=True)  # EUP vrcp
        oh = jnp.dot(p, vh, preferred_element_type=jnp.float32)
        contrib = jnp.dot(oh, wproj[h * HEAD_DIM:(h + 1) * HEAD_DIM, :],
                          preferred_element_type=jnp.float32)
        proj_acc = contrib if proj_acc is None else proj_acc + contrib

    x1 = shortcut + proj_acc + bproj_ref[...]        # first residual

    # ---- norm2 + MLP ----
    x2 = _layernorm(x1, g2_ref[...], b2_ref[...])
    hdn = jnp.dot(x2, w1_ref[...], preferred_element_type=jnp.float32) + bb1_ref[...]
    hdn = _gelu(hdn)
    mlp = jnp.dot(hdn, w2_ref[...], preferred_element_type=jnp.float32) + bb2_ref[...]

    # Matches PyTorch exactly: second residual uses the ORIGINAL input.
    out_ref[...] = shortcut + mlp


# ---------------------------- mask construction (JAX glue) -----------------------
# TODO(synk): for long sequences, generate the neighborhood mask / rpb gather
# in-kernel (broadcasted_iota) and tile K/V to the +-KS window instead of this dense
# (H, B*L, B*L) mask, which grows as H*L^2 and would exhaust v7x VMEM near L~2k.
def make_bias_mask(rpb, seq_len, kernel_size):
    """(H, L, L) additive mask: rel-pos bias inside the clamped neighborhood, -1e30 outside."""
    ns = kernel_size // 2
    i = jnp.arange(seq_len)
    j = jnp.arange(seq_len)
    win = jnp.clip(i - ns, 0, seq_len - kernel_size)            # window start per query
    inside = (j[None, :] >= win[:, None]) & (j[None, :] < win[:, None] + kernel_size)
    rel = jnp.clip(j[None, :] - i[:, None] + (kernel_size - 1), 0, 2 * kernel_size - 2)
    bias = rpb[:, rel]                                           # (H, L, L)
    return jnp.where(inside[None, :, :], bias, jnp.float32(-1e30))


def block_diag_mask(bm, bsz):
    """(H, B*L, B*L) mask, block-diagonal over batch, so one flat token axis is exact."""
    h, seq, _ = bm.shape
    full = jnp.full((h, bsz * seq, bsz * seq), jnp.float32(-1e30))
    for b in range(bsz):
        full = full.at[:, b * seq:(b + 1) * seq, b * seq:(b + 1) * seq].set(bm)
    return full


# ---------------------------- wrapper --------------------------------------------
def nat_layer_forward(x, params, bias_mask_bd):
    bsz, seq, dim = x.shape
    x2d = x.reshape(bsz * seq, dim)          # flatten batch -> one grid-less invocation
    vmem = lambda: pl.BlockSpec(memory_space=pltpu.MemorySpace.VMEM)
    operands = (x2d, params["g1"], params["b1"], params["wqkv"], params["bqkv"],
                bias_mask_bd, params["wproj"], params["bproj"], params["g2"],
                params["b2"], params["w1"], params["bb1"], params["w2"], params["bb2"])
    out2d = pl.pallas_call(
        nat_layer_kernel,
        out_shape=jax.ShapeDtypeStruct((bsz * seq, dim), jnp.float32),
        in_specs=[vmem() for _ in operands],
        out_specs=vmem(),
    )(*operands)
    return out2d.reshape(bsz, seq, dim)


# ---------------------------- pure-JAX reference ---------------------------------
def ref_forward(x, p, bias_mask):
    shortcut = x
    xn = _layernorm(x, p["g1"], p["b1"])
    qkv = xn @ p["wqkv"] + p["bqkv"]                              # (B, L, 3C)
    q = qkv[..., :DIM].reshape(B, L, HEADS, HEAD_DIM) * SCALE
    k = qkv[..., DIM:2 * DIM].reshape(B, L, HEADS, HEAD_DIM)
    v = qkv[..., 2 * DIM:].reshape(B, L, HEADS, HEAD_DIM)
    s = jnp.einsum("blhd,bmhd->bhlm", q, k) + bias_mask[None]
    a = jax.nn.softmax(s, axis=-1)
    o = jnp.einsum("bhlm,bmhd->blhd", a, v).reshape(B, L, DIM)
    proj = o @ p["wproj"] + p["bproj"]
    x1 = shortcut + proj
    x2 = _layernorm(x1, p["g2"], p["b2"])
    h = _gelu(x2 @ p["w1"] + p["bb1"])
    mlp = h @ p["w2"] + p["bb2"]
    return shortcut + mlp


# ---------------------------- parameter init --------------------------------------
def init_params(key):
    ks = jax.random.split(key, 8)
    n = lambda k, s, sc=0.02: (sc * jax.random.normal(k, s)).astype(jnp.float32)
    return {
        "g1": jnp.ones((1, DIM), jnp.float32),
        "b1": jnp.zeros((1, DIM), jnp.float32),
        "wqkv": n(ks[0], (DIM, 3 * DIM)),          # (in, out) = W_qkv.T
        "bqkv": n(ks[1], (1, 3 * DIM)),
        "rpb": n(ks[2], (HEADS, 2 * KS - 1), 0.1),
        "wproj": n(ks[3], (DIM, DIM)),
        "bproj": n(ks[4], (1, DIM)),
        "g2": jnp.ones((1, DIM), jnp.float32),
        "b2": jnp.zeros((1, DIM), jnp.float32),
        "w1": n(ks[5], (DIM, HIDDEN)),
        "bb1": n(ks[6], (1, HIDDEN)),
        "w2": n(ks[7], (HIDDEN, DIM)),
        "bb2": jnp.zeros((1, DIM), jnp.float32),
    }


if __name__ == "__main__":
    key = jax.random.PRNGKey(0)
    kp, kx = jax.random.split(key)
    params = init_params(kp)
    x = jax.random.normal(kx, (B, L, DIM), dtype=jnp.float32)

    bm = make_bias_mask(params["rpb"], L, KS)      # (H, L, L)      -> reference
    bm_bd = block_diag_mask(bm, B)                 # (H, B*L, B*L)  -> kernel

    out = nat_layer_forward(x, params, bm_bd)
    out = jax.block_until_ready(out)

    ref = ref_forward(x, params, bm)
    err = float(jnp.max(jnp.abs(out - ref)))
    assert out.shape == (B, L, DIM)
    assert err < 1e-4, f"mismatch vs reference: max abs err {err}"

    print("KERNEL_OK")
</pallas_src>

<mosaic_0001>
module attributes {stable_mosaic.version = 11 : i64} {
  func.func @nat_layer_kernel(%arg0: memref<32x32xf32, #tpu.memory_space<vmem>>, %arg1: memref<1x32xf32, #tpu.memory_space<vmem>>, %arg2: memref<1x32xf32, #tpu.memory_space<vmem>>, %arg3: memref<32x96xf32, #tpu.memory_space<vmem>>, %arg4: memref<1x96xf32, #tpu.memory_space<vmem>>, %arg5: memref<4x32x32xf32, #tpu.memory_space<vmem>>, %arg6: memref<32x32xf32, #tpu.memory_space<vmem>>, %arg7: memref<1x32xf32, #tpu.memory_space<vmem>>, %arg8: memref<1x32xf32, #tpu.memory_space<vmem>>, %arg9: memref<1x32xf32, #tpu.memory_space<vmem>>, %arg10: memref<32x128xf32, #tpu.memory_space<vmem>>, %arg11: memref<1x128xf32, #tpu.memory_space<vmem>>, %arg12: memref<128x32xf32, #tpu.memory_space<vmem>>, %arg13: memref<1x32xf32, #tpu.memory_space<vmem>>, %arg14: memref<32x32xf32, #tpu.memory_space<vmem>>) attributes {dimension_semantics = [], scalar_prefetch = 0 : i64, scratch_operands = 0 : i64, tpu.core_type = #tpu.core_type<tc>} {
    %c0 = arith.constant 0 : index
    %c0_0 = arith.constant 0 : index
    %0 = vector.load %arg0[%c0, %c0_0] : memref<32x32xf32, #tpu.memory_space<vmem>>, vector<32x32xf32>
    %c0_1 = arith.constant 0 : index
    %c0_2 = arith.constant 0 : index
    %1 = vector.load %arg1[%c0_1, %c0_2] : memref<1x32xf32, #tpu.memory_space<vmem>>, vector<1x32xf32>
    %c0_3 = arith.constant 0 : index
    %c0_4 = arith.constant 0 : index
    %2 = vector.load %arg2[%c0_3, %c0_4] : memref<1x32xf32, #tpu.memory_space<vmem>>, vector<1x32xf32>
    %cst = arith.constant dense<0.000000e+00> : vector<32xf32>
    %3 = vector.multi_reduction <add>, %0, %cst [1] : vector<32x32xf32> to vector<32xf32>
    %4 = vector.shape_cast %3 : vector<32xf32> to vector<32x1xf32>
    %cst_5 = arith.constant 3.200000e+01 : f32
    %5 = vector.broadcast %cst_5 : f32 to vector<32x1xf32>
    %6 = arith.divf %4, %5 : vector<32x1xf32>
    %7 = vector.broadcast %6 : vector<32x1xf32> to vector<32x32xf32>
    %8 = arith.subf %0, %7 : vector<32x32xf32>
    %9 = arith.mulf %8, %8 : vector<32x32xf32>
    %cst_6 = arith.constant dense<0.000000e+00> : vector<32xf32>
    %10 = vector.multi_reduction <add>, %9, %cst_6 [1] : vector<32x32xf32> to vector<32xf32>
    %11 = vector.shape_cast %10 : vector<32xf32> to vector<32x1xf32>
    %cst_7 = arith.constant 3.200000e+01 : f32
    %12 = vector.broadcast %cst_7 : f32 to vector<32x1xf32>
    %13 = arith.divf %11, %12 : vector<32x1xf32>
    %14 = vector.broadcast %6 : vector<32x1xf32> to vector<32x32xf32>
    %15 = arith.subf %0, %14 : vector<32x32xf32>
    %cst_8 = arith.constant 9.99999974E-6 : f32
    %16 = vector.broadcast %cst_8 : f32 to vector<32x1xf32>
    %17 = arith.addf %13, %16 : vector<32x1xf32>
    %18 = math.rsqrt %17 : vector<32x1xf32>
    %19 = vector.broadcast %18 : vector<32x1xf32> to vector<32x32xf32>
    %20 = arith.mulf %15, %19 : vector<32x32xf32>
    %21 = vector.broadcast %1 : vector<1x32xf32> to vector<32x32xf32>
    %22 = arith.mulf %20, %21 : vector<32x32xf32>
    %23 = vector.broadcast %2 : vector<1x32xf32> to vector<32x32xf32>
    %24 = arith.addf %22, %23 : vector<32x32xf32>
    %c0_9 = arith.constant 0 : index
    %c0_10 = arith.constant 0 : index
    %25 = vector.load %arg3[%c0_9, %c0_10] : memref<32x96xf32, #tpu.memory_space<vmem>>, vector<32x96xf32>
    %cst_11 = arith.constant dense<0.000000e+00> : vector<32x96xf32>
    %26 = tpu.matmul %24, %25, %cst_11 {dimension_numbers = #tpu.dot_dimension_numbers<[1], [0], [0], [1], [0, 0, 1, 1], [], []>} : vector<32x32xf32>, vector<32x96xf32>, vector<32x96xf32> -> vector<32x96xf32>
    %c0_12 = arith.constant 0 : index
    %c0_13 = arith.constant 0 : index
    %27 = vector.load %arg4[%c0_12, %c0_13] : memref<1x96xf32, #tpu.memory_space<vmem>>, vector<1x96xf32>
    %28 = vector.broadcast %27 : vector<1x96xf32> to vector<32x96xf32>
    %29 = arith.addf %26, %28 : vector<32x96xf32>
    %c0_14 = arith.constant 0 : index
    %c0_15 = arith.constant 0 : index
    %30 = vector.load %arg6[%c0_14, %c0_15] : memref<32x32xf32, #tpu.memory_space<vmem>>, vector<32x32xf32>
    %31 = vector.extract_strided_slice %29 {offsets = [0, 0], sizes = [32, 8], strides = [1, 1]} : vector<32x96xf32> to vector<32x8xf32>
    %cst_16 = arith.constant 0.353553385 : f32
    %32 = vector.broadcast %cst_16 : f32 to vector<32x8xf32>
    %33 = arith.mulf %31, %32 : vector<32x8xf32>
    %34 = vector.extract_strided_slice %29 {offsets = [0, 32], sizes = [32, 8], strides = [1, 1]} : vector<32x96xf32> to vector<32x8xf32>
    %35 = vector.extract_strided_slice %29 {offsets = [0, 64], sizes = [32, 8], strides = [1, 1]} : vector<32x96xf32> to vector<32x8xf32>
    %cst_17 = arith.constant dense<0.000000e+00> : vector<32x32xf32>
    %36 = tpu.matmul %33, %34, %cst_17 {dimension_numbers = #tpu.dot_dimension_numbers<[1], [1], [0], [0], [0, 0, 1, 0], [], []>} : vector<32x8xf32>, vector<32x8xf32>, vector<32x32xf32> -> vector<32x32xf32>
    %c0_18 = arith.constant 0 : index
    %c0_19 = arith.constant 0 : index
    %c0_20 = arith.constant 0 : index
    %37 = vector.load %arg5[%c0_18, %c0_19, %c0_20] : memref<4x32x32xf32, #tpu.memory_space<vmem>>, vector<1x32x32xf32>
    %38 = vector.shape_cast %37 : vector<1x32x32xf32> to vector<32x32xf32>
    %39 = arith.addf %36, %38 : vector<32x32xf32>
    %cst_21 = arith.constant dense<0xFF800000> : vector<32xf32>
    %40 = vector.multi_reduction <maximumf>, %39, %cst_21 [1] : vector<32x32xf32> to vector<32xf32>
    %41 = vector.shape_cast %40 : vector<32xf32> to vector<32x1xf32>
    %42 = vector.broadcast %41 : vector<32x1xf32> to vector<32x32xf32>
    %43 = arith.subf %39, %42 : vector<32x32xf32>
    %44 = math.exp %43 : vector<32x32xf32>
    %cst_22 = arith.constant dense<0.000000e+00> : vector<32xf32>
    %45 = vector.multi_reduction <add>, %44, %cst_22 [1] : vector<32x32xf32> to vector<32xf32>
    %46 = vector.shape_cast %45 : vector<32xf32> to vector<32x1xf32>
    %47 = tpu.reciprocal %46 {approx = true} : vector<32x1xf32> -> vector<32x1xf32>
    %48 = vector.broadcast %47 : vector<32x1xf32> to vector<32x32xf32>
    %49 = arith.mulf %44, %48 : vector<32x32xf32>
    %cst_23 = arith.constant dense<0.000000e+00> : vector<32x8xf32>
    %50 = tpu.matmul %49, %35, %cst_23 {dimension_numbers = #tpu.dot_dimension_numbers<[1], [0], [0], [1], [0, 0, 1, 1], [], []>} : vector<32x32xf32>, vector<32x8xf32>, vector<32x8xf32> -> vector<32x8xf32>
    %51 = vector.extract_strided_slice %30 {offsets = [0, 0], sizes = [8, 32], strides = [1, 1]} : vector<32x32xf32> to vector<8x32xf32>
    %cst_24 = arith.constant dense<0.000000e+00> : vector<32x32xf32>
    %52 = tpu.matmul %50, %51, %cst_24 {dimension_numbers = #tpu.dot_dimension_numbers<[1], [0], [0], [1], [0, 0, 1, 1], [], []>} : vector<32x8xf32>, vector<8x32xf32>, vector<32x32xf32> -> vector<32x32xf32>
    %53 = vector.extract_strided_slice %29 {offsets = [0, 8], sizes = [32, 8], strides = [1, 1]} : vector<32x96xf32> to vector<32x8xf32>
    %cst_25 = arith.constant 0.353553385 : f32
    %54 = vector.broadcast %cst_25 : f32 to vector<32x8xf32>
    %55 = arith.mulf %53, %54 : vector<32x8xf32>
    %56 = vector.extract_strided_slice %29 {offsets = [0, 40], sizes = [32, 8], strides = [1, 1]} : vector<32x96xf32> to vector<32x8xf32>
    %57 = vector.extract_strided_slice %29 {offsets = [0, 72], sizes = [32, 8], strides = [1, 1]} : vector<32x96xf32> to vector<32x8xf32>
    %cst_26 = arith.constant dense<0.000000e+00> : vector<32x32xf32>
    %58 = tpu.matmul %55, %56, %cst_26 {dimension_numbers = #tpu.dot_dimension_numbers<[1], [1], [0], [0], [0, 0, 1, 0], [], []>} : vector<32x8xf32>, vector<32x8xf32>, vector<32x32xf32> -> vector<32x32xf32>
    %c1 = arith.constant 1 : index
    %c0_27 = arith.constant 0 : index
    %c0_28 = arith.constant 0 : index
    %59 = vector.load %arg5[%c1, %c0_27, %c0_28] : memref<4x32x32xf32, #tpu.memory_space<vmem>>, vector<1x32x32xf32>
    %60 = vector.shape_cast %59 : vector<1x32x32xf32> to vector<32x32xf32>
    %61 = arith.addf %58, %60 : vector<32x32xf32>
    %cst_29 = arith.constant dense<0xFF800000> : vector<32xf32>
    %62 = vector.multi_reduction <maximumf>, %61, %cst_29 [1] : vector<32x32xf32> to vector<32xf32>
    %63 = vector.shape_cast %62 : vector<32xf32> to vector<32x1xf32>
    %64 = vector.broadcast %63 : vector<32x1xf32> to vector<32x32xf32>
    %65 = arith.subf %61, %64 : vector<32x32xf32>
    %66 = math.exp %65 : vector<32x32xf32>
    %cst_30 = arith.constant dense<0.000000e+00> : vector<32xf32>
    %67 = vector.multi_reduction <add>, %66, %cst_30 [1] : vector<32x32xf32> to vector<32xf32>
    %68 = vector.shape_cast %67 : vector<32xf32> to vector<32x1xf32>
    %69 = tpu.reciprocal %68 {approx = true} : vector<32x1xf32> -> vector<32x1xf32>
    %70 = vector.broadcast %69 : vector<32x1xf32> to vector<32x32xf32>
    %71 = arith.mulf %66, %70 : vector<32x32xf32>
    %cst_31 = arith.constant dense<0.000000e+00> : vector<32x8xf32>
    %72 = tpu.matmul %71, %57, %cst_31 {dimension_numbers = #tpu.dot_dimension_numbers<[1], [0], [0], [1], [0, 0, 1, 1], [], []>} : vector<32x32xf32>, vector<32x8xf32>, vector<32x8xf32> -> vector<32x8xf32>
    %73 = vector.extract_strided_slice %30 {offsets = [8, 0], sizes = [8, 32], strides = [1, 1]} : vector<32x32xf32> to vector<8x32xf32>
    %cst_32 = arith.constant dense<0.000000e+00> : vector<32x32xf32>
    %74 = tpu.matmul %72, %73, %cst_32 {dimension_numbers = #tpu.dot_dimension_numbers<[1], [0], [0], [1], [0, 0, 1, 1], [], []>} : vector<32x8xf32>, vector<8x32xf32>, vector<32x32xf32> -> vector<32x32xf32>
    %75 = arith.addf %52, %74 : vector<32x32xf32>
    %76 = vector.extract_strided_slice %29 {offsets = [0, 16], sizes = [32, 8], strides = [1, 1]} : vector<32x96xf32> to vector<32x8xf32>
    %cst_33 = arith.constant 0.353553385 : f32
    %77 = vector.broadcast %cst_33 : f32 to vector<32x8xf32>
    %78 = arith.mulf %76, %77 : vector<32x8xf32>
    %79 = vector.extract_strided_slice %29 {offsets = [0, 48], sizes = [32, 8], strides = [1, 1]} : vector<32x96xf32> to vector<32x8xf32>
    %80 = vector.extract_strided_slice %29 {offsets = [0, 80], sizes = [32, 8], strides = [1, 1]} : vector<32x96xf32> to vector<32x8xf32>
    %cst_34 = arith.constant dense<0.000000e+00> : vector<32x32xf32>
    %81 = tpu.matmul %78, %79, %cst_34 {dimension_numbers = #tpu.dot_dimension_numbers<[1], [1], [0], [0], [0, 0, 1, 0], [], []>} : vector<32x8xf32>, vector<32x8xf32>, vector<32x32xf32> -> vector<32x32xf32>
    %c2 = arith.constant 2 : index
    %c0_35 = arith.constant 0 : index
    %c0_36 = arith.constant 0 : index
    %82 = vector.load %arg5[%c2, %c0_35, %c0_36] : memref<4x32x32xf32, #tpu.memory_space<vmem>>, vector<1x32x32xf32>
    %83 = vector.shape_cast %82 : vector<1x32x32xf32> to vector<32x32xf32>
    %84 = arith.addf %81, %83 : vector<32x32xf32>
    %cst_37 = arith.constant dense<0xFF800000> : vector<32xf32>
    %85 = vector.multi_reduction <maximumf>, %84, %cst_37 [1] : vector<32x32xf32> to vector<32xf32>
    %86 = vector.shape_cast %85 : vector<32xf32> to vector<32x1xf32>
    %87 = vector.broadcast %86 : vector<32x1xf32> to vector<32x32xf32>
    %88 = arith.subf %84, %87 : vector<32x32xf32>
    %89 = math.exp %88 : vector<32x32xf32>
    %cst_38 = arith.constant dense<0.000000e+00> : vector<32xf32>
    %90 = vector.multi_reduction <add>, %89, %cst_38 [1] : vector<32x32xf32> to vector<32xf32>
    %91 = vector.shape_cast %90 : vector<32xf32> to vector<32x1xf32>
    %92 = tpu.reciprocal %91 {approx = true} : vector<32x1xf32> -> vector<32x1xf32>
    %93 = vector.broadcast %92 : vector<32x1xf32> to vector<32x32xf32>
    %94 = arith.mulf %89, %93 : vector<32x32xf32>
    %cst_39 = arith.constant dense<0.000000e+00> : vector<32x8xf32>
    %95 = tpu.matmul %94, %80, %cst_39 {dimension_numbers = #tpu.dot_dimension_numbers<[1], [0], [0], [1], [0, 0, 1, 1], [], []>} : vector<32x32xf32>, vector<32x8xf32>, vector<32x8xf32> -> vector<32x8xf32>
    %96 = vector.extract_strided_slice %30 {offsets = [16, 0], sizes = [8, 32], strides = [1, 1]} : vector<32x32xf32> to vector<8x32xf32>
    %cst_40 = arith.constant dense<0.000000e+00> : vector<32x32xf32>
    %97 = tpu.matmul %95, %96, %cst_40 {dimension_numbers = #tpu.dot_dimension_numbers<[1], [0], [0], [1], [0, 0, 1, 1], [], []>} : vector<32x8xf32>, vector<8x32xf32>, vector<32x32xf32> -> vector<32x32xf32>
    %98 = arith.addf %75, %97 : vector<32x32xf32>
    %99 = vector.extract_strided_slice %29 {offsets = [0, 24], sizes = [32, 8], strides = [1, 1]} : vector<32x96xf32> to vector<32x8xf32>
    %cst_41 = arith.constant 0.353553385 : f32
    %100 = vector.broadcast %cst_41 : f32 to vector<32x8xf32>
    %101 = arith.mulf %99, %100 : vector<32x8xf32>
    %102 = vector.extract_strided_slice %29 {offsets = [0, 56], sizes = [32, 8], strides = [1, 1]} : vector<32x96xf32> to vector<32x8xf32>
    %103 = vector.extract_strided_slice %29 {offsets = [0, 88], sizes = [32, 8], strides = [1, 1]} : vector<32x96xf32> to vector<32x8xf32>
    %cst_42 = arith.constant dense<0.000000e+00> : vector<32x32xf32>
    %104 = tpu.matmul %101, %102, %cst_42 {dimension_numbers = #tpu.dot_dimension_numbers<[1], [1], [0], [0], [0, 0, 1, 0], [], []>} : vector<32x8xf32>, vector<32x8xf32>, vector<32x32xf32> -> vector<32x32xf32>
    %c3 = arith.constant 3 : index
    %c0_43 = arith.constant 0 : index
    %c0_44 = arith.constant 0 : index
    %105 = vector.load %arg5[%c3, %c0_43, %c0_44] : memref<4x32x32xf32, #tpu.memory_space<vmem>>, vector<1x32x32xf32>
    %106 = vector.shape_cast %105 : vector<1x32x32xf32> to vector<32x32xf32>
    %107 = arith.addf %104, %106 : vector<32x32xf32>
    %cst_45 = arith.constant dense<0xFF800000> : vector<32xf32>
    %108 = vector.multi_reduction <maximumf>, %107, %cst_45 [1] : vector<32x32xf32> to vector<32xf32>
    %109 = vector.shape_cast %108 : vector<32xf32> to vector<32x1xf32>
    %110 = vector.broadcast %109 : vector<32x1xf32> to vector<32x32xf32>
    %111 = arith.subf %107, %110 : vector<32x32xf32>
    %112 = math.exp %111 : vector<32x32xf32>
    %cst_46 = arith.constant dense<0.000000e+00> : vector<32xf32>
    %113 = vector.multi_reduction <add>, %112, %cst_46 [1] : vector<32x32xf32> to vector<32xf32>
    %114 = vector.shape_cast %113 : vector<32xf32> to vector<32x1xf32>
    %115 = tpu.reciprocal %114 {approx = true} : vector<32x1xf32> -> vector<32x1xf32>
    %116 = vector.broadcast %115 : vector<32x1xf32> to vector<32x32xf32>
    %117 = arith.mulf %112, %116 : vector<32x32xf32>
    %cst_47 = arith.constant dense<0.000000e+00> : vector<32x8xf32>
    %118 = tpu.matmul %117, %103, %cst_47 {dimension_numbers = #tpu.dot_dimension_numbers<[1], [0], [0], [1], [0, 0, 1, 1], [], []>} : vector<32x32xf32>, vector<32x8xf32>, vector<32x8xf32> -> vector<32x8xf32>
    %119 = vector.extract_strided_slice %30 {offsets = [24, 0], sizes = [8, 32], strides = [1, 1]} : vector<32x32xf32> to vector<8x32xf32>
    %cst_48 = arith.constant dense<0.000000e+00> : vector<32x32xf32>
    %120 = tpu.matmul %118, %119, %cst_48 {dimension_numbers = #tpu.dot_dimension_numbers<[1], [0], [0], [1], [0, 0, 1, 1], [], []>} : vector<32x8xf32>, vector<8x32xf32>, vector<32x32xf32> -> vector<32x32xf32>
    %121 = arith.addf %98, %120 : vector<32x32xf32>
    %122 = arith.addf %0, %121 : vector<32x32xf32>
    %c0_49 = arith.constant 0 : index
    %c0_50 = arith.constant 0 : index
    %123 = vector.load %arg7[%c0_49, %c0_50] : memref<1x32xf32, #tpu.memory_space<vmem>>, vector<1x32xf32>
    %124 = vector.broadcast %123 : vector<1x32xf32> to vector<32x32xf32>
    %125 = arith.addf %122, %124 : vector<32x32xf32>
    %c0_51 = arith.constant 0 : index
    %c0_52 = arith.constant 0 : index
    %126 = vector.load %arg8[%c0_51, %c0_52] : memref<1x32xf32, #tpu.memory_space<vmem>>, vector<1x32xf32>
    %c0_53 = arith.constant 0 : index
    %c0_54 = arith.constant 0 : index
    %127 = vector.load %arg9[%c0_53, %c0_54] : memref<1x32xf32, #tpu.memory_space<vmem>>, vector<1x32xf32>
    %cst_55 = arith.constant dense<0.000000e+00> : vector<32xf32>
    %128 = vector.multi_reduction <add>, %125, %cst_55 [1] : vector<32x32xf32> to vector<32xf32>
    %129 = vector.shape_cast %128 : vector<32xf32> to vector<32x1xf32>
    %cst_56 = arith.constant 3.200000e+01 : f32
    %130 = vector.broadcast %cst_56 : f32 to vector<32x1xf32>
    %131 = arith.divf %129, %130 : vector<32x1xf32>
    %132 = vector.broadcast %131 : vector<32x1xf32> to vector<32x32xf32>
    %133 = arith.subf %125, %132 : vector<32x32xf32>
    %134 = arith.mulf %133, %133 : vector<32x32xf32>
    %cst_57 = arith.constant dense<0.000000e+00> : vector<32xf32>
    %135 = vector.multi_reduction <add>, %134, %cst_57 [1] : vector<32x32xf32> to vector<32xf32>
    %136 = vector.shape_cast %135 : vector<32xf32> to vector<32x1xf32>
    %cst_58 = arith.constant 3.200000e+01 : f32
    %137 = vector.broadcast %cst_58 : f32 to vector<32x1xf32>
    %138 = arith.divf %136, %137 : vector<32x1xf32>
    %139 = vector.broadcast %131 : vector<32x1xf32> to vector<32x32xf32>
    %140 = arith.subf %125, %139 : vector<32x32xf32>
    %cst_59 = arith.constant 9.99999974E-6 : f32
    %141 = vector.broadcast %cst_59 : f32 to vector<32x1xf32>
    %142 = arith.addf %138, %141 : vector<32x1xf32>
    %143 = math.rsqrt %142 : vector<32x1xf32>
    %144 = vector.broadcast %143 : vector<32x1xf32> to vector<32x32xf32>
    %145 = arith.mulf %140, %144 : vector<32x32xf32>
    %146 = vector.broadcast %126 : vector<1x32xf32> to vector<32x32xf32>
    %147 = arith.mulf %145, %146 : vector<32x32xf32>
    %148 = vector.broadcast %127 : vector<1x32xf32> to vector<32x32xf32>
    %149 = arith.addf %147, %148 : vector<32x32xf32>
    %c0_60 = arith.constant 0 : index
    %c0_61 = arith.constant 0 : index
    %150 = vector.load %arg10[%c0_60, %c0_61] : memref<32x128xf32, #tpu.memory_space<vmem>>, vector<32x128xf32>
    %cst_62 = arith.constant dense<0.000000e+00> : vector<32x128xf32>
    %151 = tpu.matmul %149, %150, %cst_62 {dimension_numbers = #tpu.dot_dimension_numbers<[1], [0], [0], [1], [0, 0, 1, 1], [], []>} : vector<32x32xf32>, vector<32x128xf32>, vector<32x128xf32> -> vector<32x128xf32>
    %c0_63 = arith.constant 0 : index
    %c0_64 = arith.constant 0 : index
    %152 = vector.load %arg11[%c0_63, %c0_64] : memref<1x128xf32, #tpu.memory_space<vmem>>, vector<1x128xf32>
    %153 = vector.broadcast %152 : vector<1x128xf32> to vector<32x128xf32>
    %154 = arith.addf %151, %153 : vector<32x128xf32>
    %cst_65 = arith.constant 5.000000e-01 : f32
    %155 = vector.broadcast %cst_65 : f32 to vector<32x128xf32>
    %156 = arith.mulf %155, %154 : vector<32x128xf32>
    %157 = arith.mulf %154, %154 : vector<32x128xf32>
    %158 = arith.mulf %157, %154 : vector<32x128xf32>
    %cst_66 = arith.constant 4.471500e-02 : f32
    %159 = vector.broadcast %cst_66 : f32 to vector<32x128xf32>
    %160 = arith.mulf %159, %158 : vector<32x128xf32>
    %161 = arith.addf %154, %160 : vector<32x128xf32>
    %cst_67 = arith.constant 0.797884583 : f32
    %162 = vector.broadcast %cst_67 : f32 to vector<32x128xf32>
    %163 = arith.mulf %162, %161 : vector<32x128xf32>
    %164 = math.tanh %163 : vector<32x128xf32>
    %cst_68 = arith.constant 1.000000e+00 : f32
    %165 = vector.broadcast %cst_68 : f32 to vector<32x128xf32>
    %166 = arith.addf %165, %164 : vector<32x128xf32>
    %167 = arith.mulf %156, %166 : vector<32x128xf32>
    %c0_69 = arith.constant 0 : index
    %c0_70 = arith.constant 0 : index
    %168 = vector.load %arg12[%c0_69, %c0_70] : memref<128x32xf32, #tpu.memory_space<vmem>>, vector<128x32xf32>
    %cst_71 = arith.constant dense<0.000000e+00> : vector<32x32xf32>
    %169 = tpu.matmul %167, %168, %cst_71 {dimension_numbers = #tpu.dot_dimension_numbers<[1], [0], [0], [1], [0, 0, 1, 1], [], []>} : vector<32x128xf32>, vector<128x32xf32>, vector<32x32xf32> -> vector<32x32xf32>
    %c0_72 = arith.constant 0 : index
    %c0_73 = arith.constant 0 : index
    %170 = vector.load %arg13[%c0_72, %c0_73] : memref<1x32xf32, #tpu.memory_space<vmem>>, vector<1x32xf32>
    %171 = vector.broadcast %170 : vector<1x32xf32> to vector<32x32xf32>
    %172 = arith.addf %169, %171 : vector<32x32xf32>
    %173 = arith.addf %0, %172 : vector<32x32xf32>
    %c0_74 = arith.constant 0 : index
    %c0_75 = arith.constant 0 : index
    %174 = vector.load %arg14[%c0_74, %c0_75] : memref<32x32xf32, #tpu.memory_space<vmem>>, vector<32x32xf32>
    tpu.vector_store %arg14[%c0_74, %c0_75], %173 {strides = array<i32>} : memref<32x32xf32, #tpu.memory_space<vmem>>, vector<32x32xf32>,
    return
  }
}

</mosaic_0001>

<bundles_post_ra>
// kernel: tpu_custom_call.1
= control target key start
LH: loop header
LB: loop body
LE: loop exit
PB: predicated region body
PF: predicated region fallthrough
CT: control target
= control target key end

     0   :  { %19 = vsyncpa [#allocation3], 0  ;;  %s3315_s0 = inlined_call_operand.vmem [shape: f32[32,32], index: 0, kind: input, shape index: {}]   ;;  %s3316_s1 = inlined_call_operand.vmem [shape: f32[1,32], index: 1, kind: input, shape index: {}]   ;;  %s3317_s2 = inlined_call_operand.vmem [shape: f32[1,32], index: 2, kind: input, shape index: {}]   ;;  %s3318_s3 = inlined_call_operand.hbm [shape: f32[32,96], index: 3, kind: input, shape index: {}]   ;;  %s3319_s4 = inlined_call_operand.vmem [shape: f32[1,96], index: 4, kind: input, shape index: {}]   ;;  %s3320_s5 = inlined_call_operand.vmem [shape: f32[4,32,32], index: 5, kind: input, shape index: {}]   ;;  %s3321_s6 = inlined_call_operand.hbm [shape: f32[32,32], index: 6, kind: input, shape index: {}]   ;;  %s3322_s7 = inlined_call_operand.vmem [shape: f32[1,32], index: 7, kind: input, shape index: {}]   ;;  %s3323_s8 = inlined_call_operand.vmem [shape: f32[1,32], index: 8, kind: input, shape index: {}]   ;;  %s3324_s9 = inlined_call_operand.vmem [shape: f32[1,32], index: 9, kind: input, shape index: {}]   ;;  %s3325_s10 = inlined_call_operand.hbm [shape: f32[32,128], index: 10, kind: input, shape index: {}]   ;;  %s3326_s11 = inlined_call_operand.vmem [shape: f32[1,128], index: 11, kind: input, shape index: {}]   ;;  %s3327_s12 = inlined_call_operand.vmem [shape: f32[128,32], index: 12, kind: input, shape index: {}]   ;;  %s3328_s13 = inlined_call_operand.vmem [shape: f32[1,32], index: 13, kind: input, shape index: {}]   ;;  %s3329_s14 = inlined_call_operand.hbm [shape: f32[32,32], index: 14, kind: output, shape index: {}]  }
   0x1   :  { %20 = vsyncpa [#allocation6], 0 }
   0x2   :  { %21 = vsyncpa [#allocation4], 0  ;;  %s2765_s29 = smov [#allocation5]   ;;  %s2766_s15 = smov [#allocation2]  }
   0x3   :  { %s49_s30 = sshll.u32 %s2765_s29, 4  ;;  %s33_s16 = sshll.u32 %s2766_s15, 4  ;;  %s50_s30 = int_to_ptr.vmem [resolvable:$true] %s49_s30  ;;  %s34_s16 = int_to_ptr.vmem [resolvable:$true] %s33_s16 }
   0x4   :  { %s2687_s17 = scalar_lea.vmem %s50_s30, 512  ;;  %p2692_p1 = scmp.lt.s32.totalorder %s50_s30, %s50_s30 }
   0x5   :  { %p2688_p0 = scmp.ne.s32.totalorder %s50_s30, %s2687_s17  ;;  %p2693_p2 = scmp.lt.s32.totalorder %s2687_s17, %s2687_s17 }
   0x7   :  { %p2694_p3 = por %p2693_p2, %p2692_p1 }
   0x9   :  { %p2695_p4 = pnand %p2694_p3, %p2688_p0 }
   0xb   :  { %2698 = shalt.err (!%p2695_p4)
}
   0xc   :  { %s2767_s18 = smov 128   ;;  %s2768_s19 = smov 8  }
   0xd   :  { %55 = dma.hbm_to_vmem [thread:$0]  %s3321_s6, 512, %s50_s30, [#allocation6], %s2767_s18, %s2767_s18, %s2768_s19  }
   0xe   :  { %s2707_s22 = scalar_lea.vmem %s34_s16, 512  ;;  %p2712_p6 = scmp.lt.s32.totalorder %s34_s16, %s34_s16 }
   0xf   :  { %p2708_p5 = scmp.ne.s32.totalorder %s34_s16, %s2707_s22  ;;  %p2713_p7 = scmp.lt.s32.totalorder %s2707_s22, %s2707_s22 }
  0x11   :  { %p2714_p8 = por %p2713_p7, %p2712_p6 }
  0x13   :  { %p2715_p9 = pnand %p2714_p8, %p2708_p5 }
  0x15   :  { %2718 = shalt.err (!%p2715_p9)
}
  0x16   :  { %39 = dma.hbm_to_vmem [thread:$0]  %s3318_s3, 512, %s34_s16, [#allocation3], %s2767_s18, %s2767_s18, %s2768_s19  }
  0x17   :  { %s2769_s25 = smov [#allocation7]  }
  0x18   :  { %s67_s26 = sshll.u32 %s2769_s25, 4  ;;  %s68_s26 = int_to_ptr.vmem [resolvable:$true] %s67_s26 }
  0x19   :  { %s2727_s27 = scalar_lea.vmem %s68_s26, 512  ;;  %p2732_p11 = scmp.lt.s32.totalorder %s68_s26, %s68_s26 }
  0x1a   :  { %p2728_p10 = scmp.ne.s32.totalorder %s68_s26, %s2727_s27  ;;  %p2733_p12 = scmp.lt.s32.totalorder %s2727_s27, %s2727_s27 }
  0x1c   :  { %p2734_p13 = por %p2733_p12, %p2732_p11 }
  0x1e   :  { %p2735_p0 = pnand %p2734_p13, %p2728_p10 }
  0x20   :  { %2738 = shalt.err (!%p2735_p0)
}
  0x21   :  { %73 = dma.hbm_to_vmem [thread:$0]  %s3325_s10, 512, %s68_s26, [#allocation6], %s2767_s18, %s2767_s18, %s2768_s19  }
  0x22   :  { %2759 = dma.done.wait [#allocation3], 512  }
  0x23   :  { %2760 = vsyncadd [#allocation3], 4294966784 }
  0x24   :  { %2761 = dma.done.wait [#allocation6], 1024  }
  0x25   :  { %2762 = vsyncadd [#allocation6], 4294966272  ;;  %vm95_vm0 = vcmask 261120   ;;  %v89_v0 = vld [vmem:[%s3315_s0] sm:$0xff]  ;;  %v91_v1 = vld [vmem:[%s3315_s0 + $0x10] sm:$0xff]  ;;  %vm301_vm1 = vcmask 64512  }
  0x26   :  { %v90_v2 = vld [vmem:[%s3315_s0 + $0x8] sm:$0xff]  ;;  %v96_v3 = vsel %vm95_vm0, %v89_v0, 0.0  ;;  %v102_v4 = vsel %vm95_vm0, %v91_v1, 0.0  ;;  %v92_v5 = vld [vmem:[%s3315_s0 + $0x18] sm:$0xff]  ;;  %v171_v29 = vld [vmem:[#allocation2 + $0x10] sm:$0xff]  ;;  %s2770_s25 = smov 96  }
  0x27   :  { %97 = vadd.xlane.f32.xlu0 %v96_v3  ;;  %103 = vadd.xlane.f32.xlu1 %v102_v4  ;;  %v99_v6 = vsel %vm95_vm0, %v90_v2, 0.0  ;;  %v105_v7 = vsel %vm95_vm0, %v92_v5, 0.0  ;;  %v172_v28 = vld [vmem:[#allocation2 + $0x18] sm:$0xff]  ;;  %v170_v30 = vld [vmem:[#allocation2 + $0x8] sm:$0xff]  ;;  %v169_v31 = vld [vmem:[#allocation2] sm:$0xff]  ;;  %s2772_s26 = smov 120  }
  0x28   :  { %2360 = vmatprep.subr.mxu0 %v172_v28  ;;  %v2148_v45 = vld [vmem:[%s3316_s1] ss:$0 sm:$0xff]  ;;  %s2773_s17 = smov 56   ;;  %s2774_s10 = smov 80  }
  0x29   :  { %2361 = vmatpush3.msra.mxu0 %v172_v28  ;;  %v2149_v47 = vld [vmem:[%s3317_s2] ss:$0 sm:$0xff]  ;;  %s2775_s20 = smov 112   ;;  %s2777_s27 = smov 72  }
  0x2a   :  { %2362 = vmatprep.subr.mxu0 %v171_v29  ;;  %v2150_v63 = vld [vmem:[%s3319_s4] ss:$0 sm:$0xff]  ;;  %s2771_s4 = smov 88   ;;  %s2778_s6 = smov 104  }
  0x2b   :  { %100 = vadd.xlane.f32.xlu0 %v99_v6  ;;  %106 = vadd.xlane.f32.xlu1 %v105_v7 }
  0x2c   :  { %2363 = vmatpush3.msra.mxu0 %v171_v29  ;;  %v2167_v29 = vld [vmem:[%s3320_s5 + $0x20] sm:$0xff] }
  0x2d   :  { %2364 = vmatprep.subr.mxu0 %v170_v30 }
  0x2e   :  { %2365 = vmatpush3.msra.mxu0 %v170_v30 }
  0x2f   :  { %2366 = vmatprep.subr.mxu0 %v169_v31 }
  0x30   :  { %2367 = vmatpush3.msra.mxu0 %v169_v31 }
  0xb0   :  { %v98_v8 = vpop.xlane.xlu0 %97  ;;  %v104_v9 = vpop.xlane.xlu1 %103 }
  0xb1   :  { %v109_v10 = vmul.f32 0.03125, %v98_v8  ;;  %v111_v11 = vmul.f32 0.03125, %v104_v9 }
  0xb3   :  { %v113_v12 = vsub.f32 %v89_v0, %v109_v10  ;;  %v115_v13 = vsub.f32 %v91_v1, %v111_v11 }
  0xb4   :  { %v101_v14 = vpop.xlane.xlu0 %100  ;;  %v107_v15 = vpop.xlane.xlu1 %106 }
  0xb5   :  { %v110_v16 = vmul.f32 0.03125, %v101_v14  ;;  %v112_v17 = vmul.f32 0.03125, %v107_v15  ;;  %v117_v18 = vmul.f32 %v113_v12, %v113_v12  ;;  %v119_v19 = vmul.f32 %v115_v13, %v115_v13 }
  0xb7   :  { %v114_v20 = vsub.f32 %v90_v2, %v110_v16  ;;  %v116_v21 = vsub.f32 %v92_v5, %v112_v17  ;;  %v121_v22 = vsel %vm95_vm0, %v117_v18, 0.0  ;;  %v127_v23 = vsel %vm95_vm0, %v119_v19, 0.0 }
  0xb8   :  { %122 = vadd.xlane.f32.xlu0 %v121_v22 }
  0xb9   :  { %v118_v24 = vmul.f32 %v114_v20, %v114_v20  ;;  %v120_v25 = vmul.f32 %v116_v21, %v116_v21 }
  0xbb   :  { %v124_v26 = vsel %vm95_vm0, %v118_v24, 0.0  ;;  %v130_v27 = vsel %vm95_vm0, %v120_v25, 0.0 }
  0xbc   :  { %128 = vadd.xlane.f32.xlu0 %v127_v23  ;;  %125 = vadd.xlane.f32.xlu1 %v124_v26 }
  0xc0   :  { %131 = vadd.xlane.f32.xlu1 %v130_v27  ;;  %v2168_v27 = vld [vmem:[%s3320_s5 + $0x28] sm:$0xff] }
 0x141   :  { %v123_v32 = vpop.xlane.xlu0 %122 }
 0x142   :  { %v133_v33 = vmul.f32 0.03125, %v123_v32 }
 0x144   :  { %v137_v34 = vadd.f32 1e-05, %v133_v33 }
 0x145   :  { %v126_v35 = vpop.xlane.xlu1 %125  ;;  %v129_v36 = vpop.xlane.xlu0 %128 }
 0x146   :  { %2587 = vrsqrt.f32 %v137_v34  ;;  %v134_v37 = vmul.f32 0.03125, %v126_v35  ;;  %v135_v38 = vmul.f32 0.03125, %v129_v36  ;;  %v2169_v35 = vld [vmem:[%s3320_s5 + $0x30] sm:$0xff] }
 0x148   :  { %v138_v39 = vadd.f32 1e-05, %v134_v37  ;;  %v139_v40 = vadd.f32 1e-05, %v135_v38  ;;  %v2170_v37 = vld [vmem:[%s3320_s5 + $0x38] sm:$0xff] }
 0x149   :  { %v132_v41 = vpop.xlane.xlu1 %131 }
 0x14a   :  { %2589 = vrsqrt.f32 %v138_v39  ;;  %v136_v42 = vmul.f32 0.03125, %v132_v41 }
 0x14b   :  { %2591 = vrsqrt.f32 %v139_v40 }
 0x14c   :  { %v140_v43 = vadd.f32 1e-05, %v136_v42 }
 0x14e   :  { %2593 = vrsqrt.f32 %v140_v43 }
 0x153   :  { %v2588_v44 = vpop.eup %2587 }
 0x154   :  { %v145_v46 = vmul.f32 %v2588_v44, %v113_v12 }
 0x156   :  { %v155_v48 = vmul.f32 %v2148_v45, %v145_v46 }
 0x157   :  { %v2590_v49 = vpop.eup %2589 }
 0x158   :  { %v2592_v50 = vpop.eup %2591  ;;  %v165_v51 = vadd.f32 %v2149_v47, %v155_v48  ;;  %v146_v52 = vmul.f32 %v2590_v49, %v114_v20 }
 0x159   :  { %v147_v53 = vmul.f32 %v2592_v50, %v115_v13 }
 0x15a   :  { %2368 = vmatprep.mubr.msk.f32.mxu0 %vm95_vm0, %v165_v51  ;;  %v156_v54 = vmul.f32 %v2148_v45, %v146_v52 }
 0x15b   :  { %v2594_v55 = vpop.eup %2593  ;;  %v157_v56 = vmul.f32 %v2148_v45, %v147_v53 }
 0x15c   :  { %v166_v57 = vadd.f32 %v2149_v47, %v156_v54  ;;  %v148_v58 = vmul.f32 %v2594_v55, %v116_v21 }
 0x15d   :  { %v167_v59 = vadd.f32 %v2149_v47, %v157_v56 }
 0x15e   :  { %2369 = vmatmul.mubr.msk.f32.vlgmr.msra.gmra.mxu0 %vm95_vm0, %v166_v57  ;;  %v158_v60 = vmul.f32 %v2148_v45, %v148_v58 }
 0x15f   :  { %2371 = vmatprep.mubr.msk.f32.mxu0 %vm95_vm0, %v167_v59 }
 0x160   :  { %v168_v61 = vadd.f32 %v2149_v47, %v158_v60 }
 0x162   :  { %2372 = vmatmul.mubr.msk.f32.gmra.mxu0 %vm95_vm0, %v168_v61 }
 0x21e   :  { %v2370_v62 = vpop.f32.mrf.mxu0 }
 0x21f   :  { %v2921_v7 = vadd.f32 %v2370_v62, %v2150_v63 }
 0x220   :  { %v258_v0 = vpop.f32.mrf.mxu0 }
 0x221   :  { %v2908_v1 = vadd.f32 %v2150_v63, %v258_v0  ;;  %v2935_v9 = vmul.f32 0.35355338, %v2921_v7 }
 0x222   :  { %v2373_v2 = vpop.f32.mrf.mxu0 }
 0x223   :  { %v2910_v3 = vadd.f32 %v2373_v2, %v2150_v63  ;;  %v2913_v4 = vmul.f32 0.35355338, %v2908_v1  ;;  %v287_v2 = vld [vmem:[%s3320_s5 + $0x10] sm:$0xff] }
 0x224   :  { %v268_v5 = vpop.f32.mrf.mxu0 }
 0x225   :  { %v2915_v6 = vadd.f32 %v2150_v63, %v268_v5  ;;  %2382 = vmatprep.mubr.msk.f32.mxu1 %vm301_vm1, %v2913_v4  ;;  %299 = vrot.lane.b32.xlu0 %v2910_v3, %s2770_s25  ;;  %v2939_v10 = vmul.f32 0.35355338, %v2910_v3  ;;  %v285_v63 = vld [vmem:[%s3320_s5] sm:$0xff] }
 0x227   :  { %297 = vrot.lane.b32.xlu1 %v2915_v6, %s2770_s25  ;;  %v2930_v8 = vmul.f32 0.35355338, %v2915_v6 }
 0x229   :  { %579 = vrot.lane.b32.xlu0 %v2910_v3, %s2771_s4 }
 0x22b   :  { %295 = vrot.lane.b32.xlu1 %v2921_v7, %s2770_s25 }
 0x22d   :  { %575 = vrot.lane.b32.xlu0 %v2921_v7, %s2771_s4 }
 0x22f   :  { %293 = vrot.lane.b32.xlu1 %v2908_v1, %s2770_s25 }
 0x231   :  { %565 = vrot.lane.b32.xlu0 %v2913_v4, %s2772_s26 }
 0x233   :  { %577 = vrot.lane.b32.xlu1 %v2915_v6, %s2771_s4 }
 0x235   :  { %569 = vrot.lane.b32.xlu0 %v2930_v8, %s2772_s26 }
 0x237   :  { %573 = vrot.lane.b32.xlu1 %v2908_v1, %s2771_s4  ;;  %s2781_s4 = smov [#allocation8]  }
 0x23b   :  { %567 = vrot.lane.b32.xlu1 %v2935_v9, %s2772_s26 }
 0x23f   :  { %571 = vrot.lane.b32.xlu1 %v2939_v10, %s2772_s26  ;;  %s2776_s26 = smov 64  }
 0x297   :  { %v300_v11 = vpop.permute.xlu0 %299 }
 0x298   :  { %2374 = vmatprep.subr.msk.mxu1 %vm301_vm1, %v300_v11 }
 0x299   :  { %2375 = vmatpush3.xpose.msk.msra.mxu1 %vm301_vm1, %v300_v11  ;;  %v298_v12 = vpop.permute.xlu1 %297 }
 0x29a   :  { %2376 = vmatprep.subr.msk.mxu1 %vm301_vm1, %v298_v12 }
 0x29b   :  { %v580_v14 = vpop.permute.xlu0 %579 }
 0x29d   :  { %2377 = vmatpush3.xpose.msk.msra.mxu1 %vm301_vm1, %v298_v12  ;;  %v296_v13 = vpop.permute.xlu1 %295  ;;  %v288_v12 = vld [vmem:[%s3320_s5 + $0x18] sm:$0xff] }
 0x29e   :  { %2378 = vmatprep.subr.msk.mxu1 %vm301_vm1, %v296_v13 }
 0x29f   :  { %v576_v16 = vpop.permute.xlu0 %575 }
 0x2a1   :  { %2379 = vmatpush3.xpose.msk.msra.mxu1 %vm301_vm1, %v296_v13  ;;  %v294_v15 = vpop.permute.xlu1 %293 }
 0x2a2   :  { %2380 = vmatprep.subr.msk.mxu1 %vm301_vm1, %v294_v15 }
 0x2a3   :  { %v566_v18 = vpop.permute.xlu0 %565 }
 0x2a5   :  { %2381 = vmatpush3.xpose.msk.msra.mxu1 %vm301_vm1, %v294_v15  ;;  %v578_v17 = vpop.permute.xlu1 %577  ;;  %v286_v15 = vld [vmem:[%s3320_s5 + $0x8] sm:$0xff] }
 0x2a6   :  { %2402 = vmatprep.subr.msk.mxu1 %vm301_vm1, %v580_v14 }
 0x2a7   :  { %v570_v21 = vpop.permute.xlu0 %569 }
 0x2a8   :  { %2383 = vmatmul.mubr.msk.f32.vlgmr.msra.gmra.mxu1 %vm301_vm1, %v2935_v9 }
 0x2a9   :  { %2403 = vmatpush3.xpose.msk.msra.mxu1 %vm301_vm1, %v580_v14  ;;  %2385 = vmatprep.mubr.msk.f32.mxu1 %vm301_vm1, %v2930_v8  ;;  %v574_v19 = vpop.permute.xlu1 %573 }
 0x2aa   :  { %2404 = vmatprep.subr.msk.mxu1 %vm301_vm1, %v578_v17 }
 0x2ac   :  { %2386 = vmatmul.mubr.msk.f32.gmra.mxu1 %vm301_vm1, %v2939_v10 }
 0x2ad   :  { %2405 = vmatpush3.xpose.msk.msra.mxu1 %vm301_vm1, %v578_v17  ;;  %2410 = vmatprep.mubr.msk.f32.mxu1 %vm301_vm1, %v566_v18  ;;  %v568_v20 = vpop.permute.xlu1 %567 }
 0x2ae   :  { %2406 = vmatprep.subr.msk.mxu1 %vm301_vm1, %v576_v16 }
 0x2b1   :  { %2407 = vmatpush3.xpose.msk.msra.mxu1 %vm301_vm1, %v576_v16  ;;  %v572_v22 = vpop.permute.xlu1 %571 }
 0x2b2   :  { %2408 = vmatprep.subr.msk.mxu1 %vm301_vm1, %v574_v19 }
 0x2b5   :  { %2409 = vmatpush3.xpose.msk.msra.mxu1 %vm301_vm1, %v574_v19 }
 0x2b8   :  { %2411 = vmatmul.mubr.msk.f32.vlgmr.msra.gmra.mxu1 %vm301_vm1, %v568_v20 }
 0x2b9   :  { %2413 = vmatprep.mubr.msk.f32.mxu1 %vm301_vm1, %v570_v21 }
 0x2bc   :  { %2414 = vmatmul.mubr.msk.f32.gmra.mxu1 %vm301_vm1, %v572_v22 }
 0x368   :  { %v2968_v23 = vpop.f32.mrf.mxu1 }
 0x369   :  { %v394_v16 = vadd.f32 %v2968_v23, %v286_v15 }
 0x36a   :  { %v2970_v24 = vpop.f32.mrf.mxu1 }
 0x36b   :  { %v389_v0 = vadd.f32 %v2970_v24, %v285_v63  ;;  %v410_v18 = vsel %vm95_vm0, %v394_v16, -inf }
 0x36c   :  { %v2972_v25 = vpop.f32.mrf.mxu1 }
 0x36d   :  { %v407_v11 = vsel %vm95_vm0, %v389_v0, -inf  ;;  %v3030_v13 = vadd.f32 %v2972_v25, %v288_v12 }
 0x36e   :  { %v2974_v26 = vpop.f32.mrf.mxu1 }
 0x36f   :  { %v399_v5 = vadd.f32 %v2974_v26, %v287_v2  ;;  %v416_v17 = vsel %vm95_vm0, %v3030_v13, -inf }
 0x371   :  { %v413_v14 = vsel %vm95_vm0, %v399_v5, -inf }
 0x378   :  { %v2412_v28 = vpop.f32.mrf.mxu1 }
 0x379   :  { %v669_v30 = vadd.f32 %v2412_v28, %v2168_v27 }
 0x37a   :  { %v663_v31 = vpop.f32.mrf.mxu1 }
 0x37b   :  { %v664_v32 = vadd.f32 %v2167_v29, %v663_v31  ;;  %v685_v33 = vsel %vm95_vm0, %v669_v30, -inf  ;;  %v278_v31 = vld [vmem:[#allocation5 + $0x8] sm:$0xff] }
 0x37c   :  { %686 = vmax.xlane.f32.xlu1 %v685_v33  ;;  %v2415_v34 = vpop.f32.mrf.mxu1 }
 0x37d   :  { %v682_v36 = vsel %vm95_vm0, %v664_v32, -inf  ;;  %v679_v40 = vadd.f32 %v2415_v34, %v2170_v37 }
 0x37e   :  { %v673_v38 = vpop.f32.mrf.mxu1  ;;  %683 = vmax.xlane.f32.xlu0 %v682_v36 }
 0x37f   :  { %v674_v39 = vadd.f32 %v2169_v35, %v673_v38  ;;  %v691_v42 = vsel %vm95_vm0, %v679_v40, -inf }
 0x381   :  { %v688_v41 = vsel %vm95_vm0, %v674_v39, -inf }
 0x382   :  { %689 = vmax.xlane.f32.xlu0 %v688_v41 }
 0x386   :  { %692 = vmax.xlane.f32.xlu0 %v691_v42 }
 0x405   :  { %v687_v43 = vpop.xlane.xlu1 %686 }
 0x406   :  { %v695_v44 = vsub.f32 %v669_v30, %v687_v43 }
 0x407   :  { %v684_v45 = vpop.xlane.xlu0 %683 }
 0x408   :  { %v700_v46 = vmul.f32 1.442695, %v695_v44  ;;  %v694_v47 = vsub.f32 %v664_v32, %v684_v45 }
 0x40a   :  { %2595 = vpow2.f32 %v700_v46  ;;  %v698_v48 = vmul.f32 1.442695, %v694_v47 }
 0x40b   :  { %v690_v49 = vpop.xlane.xlu0 %689 }
 0x40c   :  { %2597 = vpow2.f32 %v698_v48  ;;  %v696_v50 = vsub.f32 %v674_v39, %v690_v49 }
 0x40e   :  { %v702_v51 = vmul.f32 1.442695, %v696_v50 }
 0x40f   :  { %v693_v52 = vpop.xlane.xlu0 %692 }
 0x410   :  { %2599 = vpow2.f32 %v702_v51  ;;  %v697_v53 = vsub.f32 %v679_v40, %v693_v52 }
 0x412   :  { %v704_v54 = vmul.f32 1.442695, %v697_v53 }
 0x414   :  { %2601 = vpow2.f32 %v704_v54 }
 0x417   :  { %v2992_v55 = vpop.eup %2595 }
 0x418   :  { %v709_v56 = vsel %vm95_vm0, %v2992_v55, 0.0 }
 0x419   :  { %v2598_v57 = vpop.eup %2597  ;;  %710 = vadd.xlane.f32.xlu1 %v709_v56 }
 0x41a   :  { %v706_v58 = vsel %vm95_vm0, %v2598_v57, 0.0 }
 0x41b   :  { %707 = vadd.xlane.f32.xlu0 %v706_v58 }
 0x41d   :  { %v2997_v59 = vpop.eup %2599 }
 0x41e   :  { %v712_v60 = vsel %vm95_vm0, %v2997_v59, 0.0 }
 0x41f   :  { %713 = vadd.xlane.f32.xlu0 %v712_v60 }
 0x421   :  { %v3001_v61 = vpop.eup %2601 }
 0x422   :  { %v715_v62 = vsel %vm95_vm0, %v3001_v61, 0.0 }
 0x423   :  { %716 = vadd.xlane.f32.xlu1 %v715_v62 }
 0x434   :  { %730 = vrot.lane.b32.xlu1 %v2915_v6, %s2773_s17 }
 0x435   :  { %732 = vrot.lane.b32.xlu0 %v2910_v3, %s2773_s17 }
 0x438   :  { %728 = vrot.lane.b32.xlu1 %v2921_v7, %s2773_s17 }
 0x439   :  { %1048 = vrot.lane.b32.xlu0 %v2910_v3, %s2774_s10 }
 0x43c   :  { %726 = vrot.lane.b32.xlu1 %v2908_v1, %s2773_s17 }
 0x43d   :  { %1044 = vrot.lane.b32.xlu0 %v2921_v7, %s2774_s10 }
 0x440   :  { %1046 = vrot.lane.b32.xlu1 %v2915_v6, %s2774_s10 }
 0x441   :  { %1034 = vrot.lane.b32.xlu0 %v2913_v4, %s2775_s20 }
 0x444   :  { %1042 = vrot.lane.b32.xlu1 %v2908_v1, %s2774_s10 }
 0x445   :  { %1038 = vrot.lane.b32.xlu0 %v2930_v8, %s2775_s20 }
 0x448   :  { %1036 = vrot.lane.b32.xlu1 %v2935_v9, %s2775_s20 }
 0x44c   :  { %1040 = vrot.lane.b32.xlu1 %v2939_v10, %s2775_s20  ;;  %s2779_s20 = smov 48  }
 0x464   :  { %408 = vmax.xlane.f32.xlu0 %v407_v11 }
 0x468   :  { %414 = vmax.xlane.f32.xlu0 %v413_v14 }
 0x46c   :  { %417 = vmax.xlane.f32.xlu0 %v416_v17 }
 0x470   :  { %411 = vmax.xlane.f32.xlu1 %v410_v18 }
 0x4a2   :  { %v711_v20 = vpop.xlane.xlu1 %710 }
 0x4a4   :  { %v708_v19 = vpop.xlane.xlu0 %707 }
 0x4a5   :  { %2603 = vrcp.f32 %v708_v19 }
 0x4a6   :  { %2605 = vrcp.f32 %v711_v20 }
 0x4a8   :  { %v714_v21 = vpop.xlane.xlu0 %713 }
 0x4a9   :  { %2607 = vrcp.f32 %v714_v21 }
 0x4ac   :  { %v717_v22 = vpop.xlane.xlu1 %716  ;;  %v733_v24 = vpop.permute.xlu0 %732 }
 0x4ad   :  { %2609 = vrcp.f32 %v717_v22  ;;  %2416 = vmatprep.subr.mxu1 %v733_v24 }
 0x4ae   :  { %2417 = vmatpush3.msra.mxu1 %v733_v24 }
 0x4b0   :  { %v731_v25 = vpop.permute.xlu1 %730  ;;  %v1049_v35 = vpop.permute.xlu0 %1048 }
 0x4b1   :  { %2418 = vmatprep.subr.mxu1 %v731_v25 }
 0x4b2   :  { %v2604_v23 = vpop.eup %2603  ;;  %2419 = vmatpush3.msra.mxu1 %v731_v25 }
 0x4b3   :  { %v722_v26 = vmul.f32 %v2604_v23, %v2598_v57  ;;  %v2606_v28 = vpop.eup %2605 }
 0x4b4   :  { %v729_v27 = vpop.permute.xlu1 %728  ;;  %v723_v32 = vmul.f32 %v2606_v28, %v2992_v55  ;;  %v3048_v37 = vpop.permute.xlu0 %1044 }
 0x4b5   :  { %2420 = vmatprep.subr.mxu1 %v729_v27  ;;  %2424 = vmatprep.mubr.msk.f32.mxu1 %vm95_vm0, %v722_v26 }
 0x4b6   :  { %2421 = vmatpush3.msra.mxu1 %v729_v27  ;;  %v2608_v29 = vpop.eup %2607 }
 0x4b7   :  { %v724_v34 = vmul.f32 %v2608_v29, %v2997_v59 }
 0x4b8   :  { %v727_v30 = vpop.permute.xlu1 %726  ;;  %v1035_v38 = vpop.permute.xlu0 %1034 }
 0x4b9   :  { %2422 = vmatprep.subr.mxu1 %v727_v30 }
 0x4ba   :  { %v2610_v33 = vpop.eup %2609  ;;  %2423 = vmatpush3.msra.mxu1 %v727_v30 }
 0x4bb   :  { %2425 = vmatmul.mubr.msk.f32.vlgmr.msra.gmra.mxu1 %vm95_vm0, %v723_v32  ;;  %2430 = vmatprep.subr.mxu1 %v278_v31  ;;  %v725_v36 = vmul.f32 %v2610_v33, %v3001_v61  ;;  %v277_v32 = vld [vmem:[#allocation5] sm:$0xff] }
 0x4bc   :  { %2427 = vmatprep.mubr.msk.f32.mxu1 %vm95_vm0, %v724_v34  ;;  %2431 = vmatpush3.msra.mxu1 %v278_v31  ;;  %v1047_v39 = vpop.permute.xlu1 %1046  ;;  %v3050_v40 = vpop.permute.xlu0 %1038 }
 0x4bd   :  { %2446 = vmatprep.subr.msk.mxu1 %vm301_vm1, %v1049_v35 }
 0x4bf   :  { %2428 = vmatmul.mubr.msk.f32.gmra.mxu1 %vm95_vm0, %v725_v36 }
 0x4c0   :  { %v3052_v41 = vpop.permute.xlu1 %1042 }
 0x4c4   :  { %v1037_v44 = vpop.permute.xlu1 %1036 }
 0x4c8   :  { %v1041_v49 = vpop.permute.xlu1 %1040 }
 0x4ed   :  { %v409_v42 = vpop.xlane.xlu0 %408 }
 0x4ee   :  { %v419_v43 = vsub.f32 %v389_v0, %v409_v42 }
 0x4f0   :  { %v423_v45 = vmul.f32 1.442695, %v419_v43 }
 0x4f1   :  { %v415_v46 = vpop.xlane.xlu0 %414 }
 0x4f2   :  { %2611 = vpow2.f32 %v423_v45  ;;  %v421_v47 = vsub.f32 %v399_v5, %v415_v46  ;;  %v2193_v45 = vld [vmem:[%s3320_s5 + $0x50] sm:$0xff] }
 0x4f4   :  { %v427_v48 = vmul.f32 1.442695, %v421_v47  ;;  %v2194_v47 = vld [vmem:[%s3320_s5 + $0x58] sm:$0xff] }
 0x4f5   :  { %v418_v50 = vpop.xlane.xlu0 %417 }
 0x4f6   :  { %2613 = vpow2.f32 %v427_v48  ;;  %v422_v51 = vsub.f32 %v3030_v13, %v418_v50 }
 0x4f8   :  { %v429_v54 = vmul.f32 1.442695, %v422_v51 }
 0x4f9   :  { %v412_v52 = vpop.xlane.xlu1 %411 }
 0x4fa   :  { %v420_v53 = vsub.f32 %v394_v16, %v412_v52 }
 0x4fc   :  { %v425_v55 = vmul.f32 1.442695, %v420_v53 }
 0x4fe   :  { %2615 = vpow2.f32 %v425_v55 }
 0x4ff   :  { %v2612_v56 = vpop.eup %2611  ;;  %2617 = vpow2.f32 %v429_v54 }
 0x500   :  { %v431_v57 = vsel %vm95_vm0, %v2612_v56, 0.0 }
 0x501   :  { %432 = vadd.xlane.f32.xlu0 %v431_v57 }
 0x503   :  { %v3056_v58 = vpop.eup %2613 }
 0x504   :  { %v437_v59 = vsel %vm95_vm0, %v3056_v58, 0.0 }
 0x505   :  { %438 = vadd.xlane.f32.xlu0 %v437_v59 }
 0x50b   :  { %v3060_v60 = vpop.eup %2615 }
 0x50c   :  { %v434_v61 = vsel %vm95_vm0, %v3060_v60, 0.0  ;;  %v3064_v62 = vpop.eup %2617 }
 0x50d   :  { %435 = vadd.xlane.f32.xlu1 %v434_v61  ;;  %v440_v63 = vsel %vm95_vm0, %v3064_v62, 0.0 }
 0x511   :  { %441 = vadd.xlane.f32.xlu1 %v440_v63 }
 0x51b   :  { %457 = vrot.lane.b32.xlu0 %v2910_v3, %s2776_s26 }
 0x51f   :  { %1424 = vrot.lane.b32.xlu0 %v2910_v3, %s2777_s27 }
 0x522   :  { %455 = vrot.lane.b32.xlu1 %v2915_v6, %s2776_s26 }
 0x523   :  { %1420 = vrot.lane.b32.xlu0 %v2921_v7, %s2777_s27 }
 0x526   :  { %453 = vrot.lane.b32.xlu1 %v2921_v7, %s2776_s26 }
 0x527   :  { %1410 = vrot.lane.b32.xlu0 %v2913_v4, %s2778_s6 }
 0x52a   :  { %451 = vrot.lane.b32.xlu1 %v2908_v1, %s2776_s26 }
 0x52b   :  { %1414 = vrot.lane.b32.xlu0 %v2930_v8, %s2778_s6 }
 0x52e   :  { %1422 = vrot.lane.b32.xlu1 %v2915_v6, %s2777_s27 }
 0x532   :  { %1418 = vrot.lane.b32.xlu1 %v2908_v1, %s2777_s27 }
 0x536   :  { %1412 = vrot.lane.b32.xlu1 %v2935_v9, %s2778_s6 }
 0x53a   :  { %1416 = vrot.lane.b32.xlu1 %v2939_v10, %s2778_s6 }
 0x57b   :  { %v2426_v0 = vpop.f32.mrf.mxu1 }
 0x57d   :  { %v816_v2 = vpop.f32.mrf.mxu1 }
 0x57e   :  { %2432 = vmatprep.mubr.msk.f32.mxu1 %vm301_vm1, %v816_v2 }
 0x57f   :  { %v2429_v5 = vpop.f32.mrf.mxu1  ;;  %2433 = vmatmul.mubr.msk.f32.vlgmr.msra.gmra.mxu1 %vm301_vm1, %v2426_v0 }
 0x580   :  { %2447 = vmatpush3.xpose.msk.msra.mxu1 %vm301_vm1, %v1049_v35 }
 0x581   :  { %2448 = vmatprep.subr.msk.mxu1 %vm301_vm1, %v1047_v39  ;;  %v826_v4 = vpop.f32.mrf.mxu1 }
 0x582   :  { %2435 = vmatprep.mubr.msk.f32.mxu1 %vm301_vm1, %v826_v4 }
 0x583   :  { %2436 = vmatmul.mubr.msk.f32.gmra.mxu1 %vm301_vm1, %v2429_v5 }
 0x584   :  { %2449 = vmatpush3.xpose.msk.msra.mxu1 %vm301_vm1, %v1047_v39  ;;  %2454 = vmatprep.mubr.msk.f32.mxu1 %vm301_vm1, %v1035_v38  ;;  %v2191_v39 = vld [vmem:[%s3320_s5 + $0x40] sm:$0xff] }
 0x585   :  { %2450 = vmatprep.subr.msk.mxu1 %vm301_vm1, %v3048_v37 }
 0x588   :  { %2451 = vmatpush3.xpose.msk.msra.mxu1 %vm301_vm1, %v3048_v37  ;;  %v2192_v37 = vld [vmem:[%s3320_s5 + $0x48] sm:$0xff] }
 0x589   :  { %2452 = vmatprep.subr.msk.mxu1 %vm301_vm1, %v3052_v41 }
 0x58a   :  { %v433_v8 = vpop.xlane.xlu0 %432 }
 0x58b   :  { %2619 = vrcp.f32 %v433_v8 }
 0x58c   :  { %2453 = vmatpush3.xpose.msk.msra.mxu1 %vm301_vm1, %v3052_v41 }
 0x58e   :  { %v439_v9 = vpop.xlane.xlu0 %438 }
 0x58f   :  { %2455 = vmatmul.mubr.msk.f32.vlgmr.msra.gmra.mxu1 %vm301_vm1, %v1037_v44 }
 0x590   :  { %2457 = vmatprep.mubr.msk.f32.mxu1 %vm301_vm1, %v3050_v40 }
 0x592   :  { %v458_v10 = vpop.permute.xlu0 %457 }
 0x593   :  { %2458 = vmatmul.mubr.msk.f32.gmra.mxu1 %vm301_vm1, %v1041_v49  ;;  %2388 = vmatprep.subr.mxu0 %v458_v10 }
 0x594   :  { %2389 = vmatpush3.msra.mxu0 %v458_v10 }
 0x596   :  { %v436_v11 = vpop.xlane.xlu1 %435  ;;  %v1425_v12 = vpop.permute.xlu0 %1424 }
 0x597   :  { %2621 = vrcp.f32 %v436_v11  ;;  %2482 = vmatprep.subr.msk.mxu1 %vm301_vm1, %v1425_v12 }
 0x598   :  { %v2620_v13 = vpop.eup %2619  ;;  %2623 = vrcp.f32 %v439_v9  ;;  %2483 = vmatpush3.xpose.msk.msra.mxu1 %vm301_vm1, %v1425_v12 }
 0x599   :  { %v447_v14 = vmul.f32 %v2620_v13, %v2612_v56 }
 0x59a   :  { %v442_v15 = vpop.xlane.xlu1 %441  ;;  %v1421_v16 = vpop.permute.xlu0 %1420 }
 0x59b   :  { %2625 = vrcp.f32 %v442_v15  ;;  %2396 = vmatprep.mubr.msk.f32.mxu0 %vm95_vm0, %v447_v14 }
 0x59e   :  { %v456_v17 = vpop.permute.xlu1 %455  ;;  %v1411_v18 = vpop.permute.xlu0 %1410 }
 0x59f   :  { %2390 = vmatprep.subr.mxu0 %v456_v17  ;;  %2490 = vmatprep.mubr.msk.f32.mxu1 %vm301_vm1, %v1411_v18 }
 0x5a0   :  { %2391 = vmatpush3.msra.mxu0 %v456_v17 }
 0x5a2   :  { %v454_v19 = vpop.permute.xlu1 %453  ;;  %v1415_v30 = vpop.permute.xlu0 %1414 }
 0x5a3   :  { %2392 = vmatprep.subr.mxu0 %v454_v19 }
 0x5a4   :  { %v2622_v20 = vpop.eup %2621  ;;  %2393 = vmatpush3.msra.mxu0 %v454_v19  ;;  %v2211_v19 = vld [vmem:[%s3320_s5 + $0x60] sm:$0xff] }
 0x5a5   :  { %v2624_v21 = vpop.eup %2623  ;;  %v448_v24 = vmul.f32 %v2622_v20, %v3060_v60 }
 0x5a6   :  { %v452_v22 = vpop.permute.xlu1 %451  ;;  %v449_v23 = vmul.f32 %v2624_v21, %v3056_v58 }
 0x5a7   :  { %2394 = vmatprep.subr.mxu0 %v452_v22 }
 0x5a8   :  { %v2626_v25 = vpop.eup %2625  ;;  %2395 = vmatpush3.msra.mxu0 %v452_v22 }
 0x5a9   :  { %2397 = vmatmul.mubr.msk.f32.vlgmr.msra.gmra.mxu0 %vm95_vm0, %v448_v24  ;;  %v450_v27 = vmul.f32 %v2626_v25, %v3064_v62  ;;  %2438 = vmatprep.subr.mxu0 %v277_v32  ;;  %v2213_v24 = vld [vmem:[%s3320_s5 + $0x70] sm:$0xff] }
 0x5aa   :  { %v1423_v26 = vpop.permute.xlu1 %1422  ;;  %2399 = vmatprep.mubr.msk.f32.mxu0 %vm95_vm0, %v449_v23  ;;  %2439 = vmatpush3.msra.mxu0 %v277_v32 }
 0x5ab   :  { %2484 = vmatprep.subr.msk.mxu1 %vm301_vm1, %v1423_v26 }
 0x5ac   :  { %2485 = vmatpush3.xpose.msk.msra.mxu1 %vm301_vm1, %v1423_v26  ;;  %v2214_v26 = vld [vmem:[%s3320_s5 + $0x78] sm:$0xff] }
 0x5ad   :  { %2400 = vmatmul.mubr.msk.f32.gmra.mxu0 %vm95_vm0, %v450_v27  ;;  %2486 = vmatprep.subr.msk.mxu1 %vm301_vm1, %v1421_v16 }
 0x5ae   :  { %v1419_v28 = vpop.permute.xlu1 %1418 }
 0x5b0   :  { %2487 = vmatpush3.xpose.msk.msra.mxu1 %vm301_vm1, %v1421_v16 }
 0x5b1   :  { %2488 = vmatprep.subr.msk.mxu1 %vm301_vm1, %v1419_v28 }
 0x5b2   :  { %v1413_v29 = vpop.permute.xlu1 %1412 }
 0x5b4   :  { %2489 = vmatpush3.xpose.msk.msra.mxu1 %vm301_vm1, %v1419_v28 }
 0x5b6   :  { %v1417_v31 = vpop.permute.xlu1 %1416 }
 0x5b7   :  { %2491 = vmatmul.mubr.msk.f32.vlgmr.msra.gmra.mxu1 %vm301_vm1, %v1413_v29  ;;  %v2212_v29 = vld [vmem:[%s3320_s5 + $0x68] sm:$0xff]  ;;  %s2780_s5 = smov 40  }
 0x5b8   :  { %2493 = vmatprep.mubr.msk.f32.mxu1 %vm301_vm1, %v1415_v30 }
 0x5bb   :  { %2494 = vmatmul.mubr.msk.f32.gmra.mxu1 %vm301_vm1, %v1417_v31 }
 0x63f   :  { %v3119_v33 = vpop.f32.mrf.mxu1 }
 0x641   :  { %v3121_v34 = vpop.f32.mrf.mxu1 }
 0x643   :  { %v3123_v35 = vpop.f32.mrf.mxu1 }
 0x645   :  { %v3125_v36 = vpop.f32.mrf.mxu1 }
 0x64f   :  { %v2456_v38 = vpop.f32.mrf.mxu1 }
 0x650   :  { %v1138_v40 = vadd.f32 %v2456_v38, %v2192_v37 }
 0x651   :  { %v1132_v41 = vpop.f32.mrf.mxu1 }
 0x652   :  { %v1133_v42 = vadd.f32 %v2191_v39, %v1132_v41  ;;  %v1154_v43 = vsel %vm95_vm0, %v1138_v40, -inf }
 0x653   :  { %v2459_v44 = vpop.f32.mrf.mxu1  ;;  %1155 = vmax.xlane.f32.xlu1 %v1154_v43 }
 0x654   :  { %v1151_v46 = vsel %vm95_vm0, %v1133_v42, -inf  ;;  %v1148_v50 = vadd.f32 %v2459_v44, %v2194_v47 }
 0x655   :  { %v1142_v48 = vpop.f32.mrf.mxu1  ;;  %1152 = vmax.xlane.f32.xlu0 %v1151_v46 }
 0x656   :  { %v1143_v49 = vadd.f32 %v2193_v45, %v1142_v48  ;;  %v1160_v52 = vsel %vm95_vm0, %v1148_v50, -inf }
 0x658   :  { %v1157_v51 = vsel %vm95_vm0, %v1143_v49, -inf }
 0x659   :  { %1158 = vmax.xlane.f32.xlu0 %v1157_v51 }
 0x65d   :  { %1161 = vmax.xlane.f32.xlu0 %v1160_v52 }
 0x669   :  { %v2398_v53 = vpop.f32.mrf.mxu0 }
 0x66b   :  { %v541_v54 = vpop.f32.mrf.mxu0 }
 0x66c   :  { %2440 = vmatprep.mubr.msk.f32.mxu0 %vm301_vm1, %v541_v54 }
 0x66d   :  { %v2401_v55 = vpop.f32.mrf.mxu0  ;;  %2441 = vmatmul.mubr.msk.f32.vlgmr.msra.gmra.mxu0 %vm301_vm1, %v2398_v53 }
 0x66f   :  { %v551_v56 = vpop.f32.mrf.mxu0 }
 0x670   :  { %2443 = vmatprep.mubr.msk.f32.mxu0 %vm301_vm1, %v551_v56 }
 0x671   :  { %2444 = vmatmul.mubr.msk.f32.gmra.mxu0 %vm301_vm1, %v2401_v55 }
 0x677   :  { %v2492_v17 = vpop.f32.mrf.mxu1 }
 0x678   :  { %v1514_v30 = vadd.f32 %v2492_v17, %v2212_v29 }
 0x679   :  { %v1508_v18 = vpop.f32.mrf.mxu1 }
 0x67a   :  { %v1509_v21 = vadd.f32 %v2211_v19, %v1508_v18  ;;  %v1530_v32 = vsel %vm95_vm0, %v1514_v30, -inf }
 0x67b   :  { %v2495_v20 = vpop.f32.mrf.mxu1 }
 0x67c   :  { %v1527_v23 = vsel %vm95_vm0, %v1509_v21, -inf  ;;  %v1524_v27 = vadd.f32 %v2495_v20, %v2214_v26 }
 0x67d   :  { %v1518_v22 = vpop.f32.mrf.mxu1 }
 0x67e   :  { %v1519_v25 = vadd.f32 %v2213_v24, %v1518_v22  ;;  %v1536_v31 = vsel %vm95_vm0, %v1524_v27, -inf }
 0x680   :  { %v1533_v28 = vsel %vm95_vm0, %v1519_v25, -inf }
 0x6dc   :  { %v1156_v57 = vpop.xlane.xlu1 %1155 }
 0x6dd   :  { %v1164_v58 = vsub.f32 %v1138_v40, %v1156_v57 }
 0x6de   :  { %v1153_v59 = vpop.xlane.xlu0 %1152 }
 0x6df   :  { %v1169_v60 = vmul.f32 1.442695, %v1164_v58  ;;  %v1163_v61 = vsub.f32 %v1133_v42, %v1153_v59 }
 0x6e1   :  { %2627 = vpow2.f32 %v1169_v60  ;;  %v1167_v62 = vmul.f32 1.442695, %v1163_v61 }
 0x6e2   :  { %v1159_v63 = vpop.xlane.xlu0 %1158 }
 0x6e3   :  { %2629 = vpow2.f32 %v1167_v62  ;;  %v1165_v0 = vsub.f32 %v1143_v49, %v1159_v63 }
 0x6e5   :  { %v1171_v2 = vmul.f32 1.442695, %v1165_v0 }
 0x6e6   :  { %v1162_v5 = vpop.xlane.xlu0 %1161 }
 0x6e7   :  { %2631 = vpow2.f32 %v1171_v2  ;;  %v1166_v4 = vsub.f32 %v1148_v50, %v1162_v5 }
 0x6e9   :  { %v1173_v8 = vmul.f32 1.442695, %v1166_v4 }
 0x6eb   :  { %2633 = vpow2.f32 %v1173_v8 }
 0x6ee   :  { %v2628_v9 = vpop.eup %2627 }
 0x6ef   :  { %v1178_v10 = vsel %vm95_vm0, %v2628_v9, 0.0 }
 0x6f0   :  { %v2630_v11 = vpop.eup %2629  ;;  %1179 = vadd.xlane.f32.xlu1 %v1178_v10 }
 0x6f1   :  { %v1175_v12 = vsel %vm95_vm0, %v2630_v11, 0.0 }
 0x6f2   :  { %1176 = vadd.xlane.f32.xlu0 %v1175_v12 }
 0x6f4   :  { %v2632_v13 = vpop.eup %2631 }
 0x6f5   :  { %v1181_v14 = vsel %vm95_vm0, %v2632_v13, 0.0 }
 0x6f6   :  { %1182 = vadd.xlane.f32.xlu0 %v1181_v14 }
 0x6f8   :  { %v2634_v15 = vpop.eup %2633 }
 0x6f9   :  { %v1184_v16 = vsel %vm95_vm0, %v2634_v15, 0.0 }
 0x6fa   :  { %1185 = vadd.xlane.f32.xlu1 %v1184_v16 }
 0x70b   :  { %1199 = vrot.lane.b32.xlu1 %v2915_v6, %s2779_s20 }
 0x70c   :  { %1201 = vrot.lane.b32.xlu0 %v2910_v3, %s2779_s20 }
 0x70f   :  { %1197 = vrot.lane.b32.xlu1 %v2921_v7, %s2779_s20 }
 0x713   :  { %1195 = vrot.lane.b32.xlu1 %v2908_v1, %s2779_s20 }
 0x72b   :  { %1528 = vmax.xlane.f32.xlu0 %v1527_v23 }
 0x72d   :  { %v2442_v14 = vpop.f32.mrf.mxu0 }
 0x72f   :  { %1534 = vmax.xlane.f32.xlu0 %v1533_v28 }
 0x733   :  { %1537 = vmax.xlane.f32.xlu0 %v1536_v31 }
 0x737   :  { %1531 = vmax.xlane.f32.xlu1 %v1530_v32 }
 0x779   :  { %v1180_v38 = vpop.xlane.xlu1 %1179 }
 0x77b   :  { %v1177_v37 = vpop.xlane.xlu0 %1176 }
 0x77c   :  { %2635 = vrcp.f32 %v1177_v37 }
 0x77d   :  { %2637 = vrcp.f32 %v1180_v38  ;;  %v280_v38 = vld [vmem:[#allocation5 + $0x18] sm:$0xff] }
 0x77f   :  { %v1183_v39 = vpop.xlane.xlu0 %1182 }
 0x780   :  { %2639 = vrcp.f32 %v1183_v39  ;;  %v1016_v39 = vadd.f32 %v2442_v14, %v3119_v33 }
 0x783   :  { %v1186_v40 = vpop.xlane.xlu1 %1185  ;;  %v1202_v41 = vpop.permute.xlu0 %1201 }
 0x784   :  { %2641 = vrcp.f32 %v1186_v40  ;;  %2460 = vmatprep.subr.mxu0 %v1202_v41 }
 0x785   :  { %2461 = vmatpush3.msra.mxu0 %v1202_v41 }
 0x787   :  { %v1200_v42 = vpop.permute.xlu1 %1199 }
 0x788   :  { %2462 = vmatprep.subr.mxu0 %v1200_v42 }
 0x789   :  { %v2636_v43 = vpop.eup %2635  ;;  %2463 = vmatpush3.msra.mxu0 %v1200_v42 }
 0x78a   :  { %v1191_v44 = vmul.f32 %v2636_v43, %v2630_v11  ;;  %v2638_v46 = vpop.eup %2637  ;;  %v279_v11 = vld [vmem:[#allocation5 + $0x10] sm:$0xff] }
 0x78b   :  { %v1198_v45 = vpop.permute.xlu1 %1197  ;;  %v1192_v49 = vmul.f32 %v2638_v46, %v2628_v9 }
 0x78c   :  { %2464 = vmatprep.subr.mxu0 %v1198_v45  ;;  %2468 = vmatprep.mubr.msk.f32.mxu0 %vm95_vm0, %v1191_v44 }
 0x78d   :  { %2465 = vmatpush3.msra.mxu0 %v1198_v45  ;;  %v2640_v47 = vpop.eup %2639 }
 0x78e   :  { %v1193_v51 = vmul.f32 %v2640_v47, %v2632_v13 }
 0x78f   :  { %v1196_v48 = vpop.permute.xlu1 %1195 }
 0x790   :  { %2466 = vmatprep.subr.mxu0 %v1196_v48 }
 0x791   :  { %v2642_v50 = vpop.eup %2641  ;;  %2467 = vmatpush3.msra.mxu0 %v1196_v48 }
 0x792   :  { %2469 = vmatmul.mubr.msk.f32.vlgmr.msra.gmra.mxu0 %vm95_vm0, %v1192_v49  ;;  %v1194_v52 = vmul.f32 %v2642_v50, %v2634_v15  ;;  %2474 = vmatprep.subr.mxu0 %v279_v11  ;;  %v1010_v15 = vpop.f32.mrf.mxu0 }
 0x793   :  { %2471 = vmatprep.mubr.msk.f32.mxu0 %vm95_vm0, %v1193_v51  ;;  %2475 = vmatpush3.msra.mxu0 %v279_v11  ;;  %v1011_v41 = vadd.f32 %v1010_v15, %v3121_v34 }
 0x794   :  { %v2445_v16 = vpop.f32.mrf.mxu0 }
 0x795   :  { %v1026_v44 = vadd.f32 %v2445_v16, %v3123_v35  ;;  %v2231_v35 = vld [vmem:[%s3322_s7] ss:$0 sm:$0xff] }
 0x796   :  { %2472 = vmatmul.mubr.msk.f32.gmra.mxu0 %vm95_vm0, %v1194_v52  ;;  %v3183_v17 = vpop.f32.mrf.mxu0 }
 0x7b4   :  { %v1529_v53 = vpop.xlane.xlu0 %1528 }
 0x7b5   :  { %v1539_v54 = vsub.f32 %v1509_v21, %v1529_v53 }
 0x7b7   :  { %v1543_v55 = vmul.f32 1.442695, %v1539_v54  ;;  %v1021_v54 = vadd.f32 %v3183_v17, %v3125_v36 }
 0x7b8   :  { %v1535_v56 = vpop.xlane.xlu0 %1534 }
 0x7b9   :  { %2643 = vpow2.f32 %v1543_v55  ;;  %v1541_v57 = vsub.f32 %v1519_v25, %v1535_v56  ;;  %v3208_v55 = vld [vmem:[%s3315_s0 + $0x8] sm:$0xff] }
 0x7bb   :  { %v1547_v58 = vmul.f32 1.442695, %v1541_v57 }
 0x7bc   :  { %v1538_v59 = vpop.xlane.xlu0 %1537 }
 0x7bd   :  { %2645 = vpow2.f32 %v1547_v58  ;;  %v1542_v60 = vsub.f32 %v1524_v27, %v1538_v59 }
 0x7bf   :  { %v1549_v63 = vmul.f32 1.442695, %v1542_v60  ;;  %v3214_v60 = vld [vmem:[%s3315_s0] sm:$0xff] }
 0x7c0   :  { %v1532_v61 = vpop.xlane.xlu1 %1531 }
 0x7c1   :  { %v1540_v62 = vsub.f32 %v1514_v30, %v1532_v61 }
 0x7c3   :  { %v1545_v0 = vmul.f32 1.442695, %v1540_v62 }
 0x7c5   :  { %2647 = vpow2.f32 %v1545_v0 }
 0x7c6   :  { %v2644_v2 = vpop.eup %2643  ;;  %2649 = vpow2.f32 %v1549_v63 }
 0x7c7   :  { %v1551_v5 = vsel %vm95_vm0, %v2644_v2, 0.0 }
 0x7c8   :  { %1552 = vadd.xlane.f32.xlu0 %v1551_v5 }
 0x7ca   :  { %v2646_v4 = vpop.eup %2645 }
 0x7cb   :  { %v1557_v8 = vsel %vm95_vm0, %v2646_v4, 0.0 }
 0x7cc   :  { %1558 = vadd.xlane.f32.xlu0 %v1557_v8 }
 0x7d2   :  { %v2648_v9 = vpop.eup %2647 }
 0x7d3   :  { %v1554_v10 = vsel %vm95_vm0, %v2648_v9, 0.0  ;;  %v2650_v12 = vpop.eup %2649 }
 0x7d4   :  { %1555 = vadd.xlane.f32.xlu1 %v1554_v10  ;;  %v1560_v13 = vsel %vm95_vm0, %v2650_v12, 0.0 }
 0x7d8   :  { %1561 = vadd.xlane.f32.xlu1 %v1560_v13 }
 0x7e2   :  { %1577 = vrot.lane.b32.xlu0 %v2910_v3, %s2780_s5 }
 0x7e9   :  { %1575 = vrot.lane.b32.xlu1 %v2915_v6, %s2780_s5 }
 0x7ed   :  { %1573 = vrot.lane.b32.xlu1 %v2921_v7, %s2780_s5 }
 0x7f1   :  { %1571 = vrot.lane.b32.xlu1 %v2908_v1, %s2780_s5  ;;  %s2135_s5 = sshll.u32 %s2781_s4, 4  ;;  %s2136_s5 = int_to_ptr.vmem [resolvable:$true] %s2135_s5 }
 0x7f2   :  { %p2744_p2 = scmp.lt.s32.totalorder %s2136_s5, %s2136_s5 }
 0x851   :  { %v1553_v18 = vpop.xlane.xlu0 %1552 }
 0x852   :  { %2651 = vrcp.f32 %v1553_v18  ;;  %v2470_v19 = vpop.f32.mrf.mxu0 }
 0x854   :  { %v1285_v20 = vpop.f32.mrf.mxu0 }
 0x855   :  { %2476 = vmatprep.mubr.msk.f32.mxu0 %vm301_vm1, %v1285_v20  ;;  %v1559_v21 = vpop.xlane.xlu0 %1558 }
 0x856   :  { %v2473_v22 = vpop.f32.mrf.mxu0  ;;  %2477 = vmatmul.mubr.msk.f32.vlgmr.msra.gmra.mxu0 %vm301_vm1, %v2470_v19 }
 0x858   :  { %v1295_v3 = vpop.f32.mrf.mxu0 }
 0x859   :  { %2479 = vmatprep.mubr.msk.f32.mxu0 %vm301_vm1, %v1295_v3  ;;  %v1578_v6 = vpop.permute.xlu0 %1577 }
 0x85a   :  { %2480 = vmatmul.mubr.msk.f32.gmra.mxu0 %vm301_vm1, %v2473_v22  ;;  %2496 = vmatprep.subr.mxu0 %v1578_v6 }
 0x85b   :  { %2497 = vmatpush3.msra.mxu0 %v1578_v6 }
 0x85d   :  { %v1556_v1 = vpop.xlane.xlu1 %1555 }
 0x85e   :  { %2653 = vrcp.f32 %v1556_v1 }
 0x85f   :  { %v2652_v7 = vpop.eup %2651  ;;  %2655 = vrcp.f32 %v1559_v21 }
 0x860   :  { %v1567_v24 = vmul.f32 %v2652_v7, %v2644_v2 }
 0x861   :  { %v1562_v25 = vpop.xlane.xlu1 %1561 }
 0x862   :  { %2657 = vrcp.f32 %v1562_v25  ;;  %2504 = vmatprep.mubr.msk.f32.mxu0 %vm95_vm0, %v1567_v24 }
 0x865   :  { %v1576_v23 = vpop.permute.xlu1 %1575 }
 0x866   :  { %2498 = vmatprep.subr.mxu0 %v1576_v23 }
 0x867   :  { %2499 = vmatpush3.msra.mxu0 %v1576_v23 }
 0x869   :  { %v1574_v26 = vpop.permute.xlu1 %1573 }
 0x86a   :  { %2500 = vmatprep.subr.mxu0 %v1574_v26 }
 0x86b   :  { %v2654_v27 = vpop.eup %2653  ;;  %2501 = vmatpush3.msra.mxu0 %v1574_v26 }
 0x86c   :  { %v2656_v28 = vpop.eup %2655  ;;  %v1568_v30 = vmul.f32 %v2654_v27, %v2648_v9  ;;  %v3227_v9 = vld [vmem:[%s3315_s0 + $0x10] sm:$0xff] }
 0x86d   :  { %v1572_v29 = vpop.permute.xlu1 %1571  ;;  %v1569_v32 = vmul.f32 %v2656_v28, %v2646_v4  ;;  %v3221_v4 = vld [vmem:[%s3315_s0 + $0x18] sm:$0xff] }
 0x86e   :  { %2502 = vmatprep.subr.mxu0 %v1572_v29 }
 0x86f   :  { %v2658_v31 = vpop.eup %2657  ;;  %2503 = vmatpush3.msra.mxu0 %v1572_v29 }
 0x870   :  { %2505 = vmatmul.mubr.msk.f32.vlgmr.msra.gmra.mxu0 %vm95_vm0, %v1568_v30  ;;  %v1570_v37 = vmul.f32 %v2658_v31, %v2650_v12  ;;  %2510 = vmatprep.subr.mxu0 %v280_v38 }
 0x871   :  { %2507 = vmatprep.mubr.msk.f32.mxu0 %vm95_vm0, %v1569_v32  ;;  %2511 = vmatpush3.msra.mxu0 %v280_v38  ;;  %v1873_v32 = vld [vmem:[#allocation7 + $0x18] sm:$0xff]  ;;  %v1871_v38 = vld [vmem:[#allocation7 + $0x8] sm:$0xff] }
 0x872   :  { %2518 = vmatprep.subr.mxu1 %v1873_v32 }
 0x873   :  { %2519 = vmatpush3.msra.mxu1 %v1873_v32 }
 0x874   :  { %2508 = vmatmul.mubr.msk.f32.gmra.mxu0 %vm95_vm0, %v1570_v37  ;;  %v1872_v37 = vld [vmem:[#allocation7 + $0x10] sm:$0xff] }
 0x875   :  { %2520 = vmatprep.subr.mxu1 %v1872_v37 }
 0x876   :  { %2521 = vmatpush3.msra.mxu1 %v1872_v37 }
 0x877   :  { %2522 = vmatprep.subr.mxu1 %v1871_v38 }
 0x878   :  { %2523 = vmatpush3.msra.mxu1 %v1871_v38 }
 0x916   :  { %v2478_v40 = vpop.f32.mrf.mxu0 }
 0x917   :  { %v1402_v42 = vadd.f32 %v2478_v40, %v1016_v39  ;;  %v1870_v39 = vld [vmem:[#allocation7] sm:$0xff] }
 0x918   :  { %v1382_v43 = vpop.f32.mrf.mxu0  ;;  %2524 = vmatprep.subr.mxu1 %v1870_v39 }
 0x919   :  { %v1401_v45 = vadd.f32 %v1382_v43, %v1011_v41  ;;  %2525 = vmatpush3.msra.mxu1 %v1870_v39 }
 0x91a   :  { %v2481_v46 = vpop.f32.mrf.mxu0 }
 0x91b   :  { %v1404_v47 = vadd.f32 %v2481_v46, %v1026_v44 }
 0x91c   :  { %v1392_v48 = vpop.f32.mrf.mxu0 }
 0x91d   :  { %v1403_v59 = vadd.f32 %v1392_v48, %v1021_v54 }
 0x930   :  { %v2506_v49 = vpop.f32.mrf.mxu0 }
 0x932   :  { %v1661_v50 = vpop.f32.mrf.mxu0 }
 0x933   :  { %2512 = vmatprep.mubr.msk.f32.mxu0 %vm301_vm1, %v1661_v50 }
 0x934   :  { %v2509_v51 = vpop.f32.mrf.mxu0  ;;  %2513 = vmatmul.mubr.msk.f32.vlgmr.msra.gmra.mxu0 %vm301_vm1, %v2506_v49 }
 0x936   :  { %v1671_v52 = vpop.f32.mrf.mxu0 }
 0x937   :  { %2515 = vmatprep.mubr.msk.f32.mxu0 %vm301_vm1, %v1671_v52 }
 0x938   :  { %2516 = vmatmul.mubr.msk.f32.gmra.mxu0 %vm301_vm1, %v2509_v51 }
 0x9f4   :  { %v2514_v33 = vpop.f32.mrf.mxu0 }
 0x9f5   :  { %v1778_v34 = vadd.f32 %v2514_v33, %v1402_v42 }
 0x9f6   :  { %v1758_v53 = vpop.f32.mrf.mxu0 }
 0x9f7   :  { %v1782_v56 = vadd.f32 %v3208_v55, %v1778_v34  ;;  %v1777_v57 = vadd.f32 %v1758_v53, %v1401_v45  ;;  %v2232_v34 = vld [vmem:[%s3323_s8] ss:$0 sm:$0xff] }
 0x9f8   :  { %v2517_v58 = vpop.f32.mrf.mxu0 }
 0x9f9   :  { %v1781_v61 = vadd.f32 %v3214_v60, %v1777_v57  ;;  %v1780_v62 = vadd.f32 %v2517_v58, %v1404_v47  ;;  %v1793_v63 = vadd.f32 %v2231_v35, %v1782_v56  ;;  %v2233_v56 = vld [vmem:[%s3324_s9] ss:$0 sm:$0xff] }
 0x9fa   :  { %v1768_v36 = vpop.f32.mrf.mxu0 }
 0x9fb   :  { %v1779_v0 = vadd.f32 %v1768_v36, %v1403_v59  ;;  %v1801_v2 = vsel %vm95_vm0, %v1793_v63, 0.0  ;;  %v1792_v5 = vadd.f32 %v2231_v35, %v1781_v61  ;;  %v1784_v8 = vadd.f32 %v3221_v4, %v1780_v62 }
 0x9fc   :  { %1802 = vadd.xlane.f32.xlu1 %v1801_v2 }
 0x9fd   :  { %v1783_v10 = vadd.f32 %v3227_v9, %v1779_v0  ;;  %v1798_v11 = vsel %vm95_vm0, %v1792_v5, 0.0  ;;  %v1795_v14 = vadd.f32 %v2231_v35, %v1784_v8 }
 0x9fe   :  { %1799 = vadd.xlane.f32.xlu0 %v1798_v11  ;;  %v2028_v11 = vld [vmem:[%s3327_s12 + $0x70] sm:$0xff] }
 0x9ff   :  { %v1794_v12 = vadd.f32 %v2231_v35, %v1783_v10  ;;  %v1807_v15 = vsel %vm95_vm0, %v1795_v14, 0.0  ;;  %v2029_v10 = vld [vmem:[%s3327_s12 + $0x78] sm:$0xff] }
 0xa00   :  { %2532 = vmatprep.subr.mxu0 %v2029_v10 }
 0xa01   :  { %v1804_v13 = vsel %vm95_vm0, %v1794_v12, 0.0  ;;  %2533 = vmatpush3.msra.mxu0 %v2029_v10 }
 0xa02   :  { %1805 = vadd.xlane.f32.xlu0 %v1804_v13  ;;  %2534 = vmatprep.subr.mxu0 %v2028_v11  ;;  %v2026_v13 = vld [vmem:[%s3327_s12 + $0x60] sm:$0xff] }
 0xa03   :  { %2535 = vmatpush3.msra.mxu0 %v2028_v11  ;;  %v2239_v11 = vld [vmem:[%s3328_s13] ss:$0 sm:$0xff]  ;;  %s2739_s13 = scalar_lea.vmem %s2136_s5, 512 }
 0xa04   :  { %p2740_p1 = scmp.ne.s32.totalorder %s2136_s5, %s2739_s13  ;;  %p2745_p3 = scmp.lt.s32.totalorder %s2739_s13, %s2739_s13 }
 0xa06   :  { %1808 = vadd.xlane.f32.xlu0 %v1807_v15  ;;  %v2024_v15 = vld [vmem:[%s3327_s12 + $0x50] sm:$0xff]  ;;  %p2746_p4 = por %p2745_p3, %p2744_p2 }
 0xa08   :  { %p2747_p5 = pnand %p2746_p4, %p2740_p1 }
 0xa85   :  { %v1803_v16 = vpop.xlane.xlu1 %1802 }
 0xa86   :  { %v1811_v17 = vmul.f32 0.03125, %v1803_v16  ;;  %v2023_v16 = vld [vmem:[%s3327_s12 + $0x48] sm:$0xff] }
 0xa87   :  { %v1800_v18 = vpop.xlane.xlu0 %1799 }
 0xa88   :  { %v1815_v19 = vsub.f32 %v1793_v63, %v1811_v17  ;;  %v1810_v20 = vmul.f32 0.03125, %v1800_v18  ;;  %v2022_v17 = vld [vmem:[%s3327_s12 + $0x40] sm:$0xff]  ;;  %v2021_v18 = vld [vmem:[%s3327_s12 + $0x38] sm:$0xff] }
 0xa8a   :  { %v1814_v21 = vsub.f32 %v1792_v5, %v1810_v20  ;;  %v1819_v22 = vmul.f32 %v1815_v19, %v1815_v19  ;;  %v2019_v20 = vld [vmem:[%s3327_s12 + $0x28] sm:$0xff] }
 0xa8b   :  { %v1806_v3 = vpop.xlane.xlu0 %1805 }
 0xa8c   :  { %v1812_v6 = vmul.f32 0.03125, %v1806_v3  ;;  %v1825_v1 = vsel %vm95_vm0, %v1819_v22, 0.0  ;;  %v1818_v7 = vmul.f32 %v1814_v21, %v1814_v21  ;;  %v2017_v22 = vld [vmem:[%s3327_s12 + $0x18] sm:$0xff]  ;;  %v2016_v3 = vld [vmem:[%s3327_s12 + $0x10] sm:$0xff] }
 0xa8d   :  { %1826 = vadd.xlane.f32.xlu1 %v1825_v1  ;;  %v2014_v1 = vld [vmem:[%s3327_s12] sm:$0xff] }
 0xa8e   :  { %v1816_v24 = vsub.f32 %v1794_v12, %v1812_v6  ;;  %v1822_v25 = vsel %vm95_vm0, %v1818_v7, 0.0  ;;  %v2027_v12 = vld [vmem:[%s3327_s12 + $0x68] sm:$0xff]  ;;  %v2234_v7 = vld [vmem:[%s3326_s11] ss:$0 sm:$0xff] }
 0xa8f   :  { %1823 = vadd.xlane.f32.xlu0 %v1822_v25  ;;  %v1809_v23 = vpop.xlane.xlu0 %1808  ;;  %2536 = vmatprep.subr.mxu0 %v2027_v12  ;;  %v2015_v6 = vld [vmem:[%s3327_s12 + $0x8] sm:$0xff] }
 0xa90   :  { %v1813_v26 = vmul.f32 0.03125, %v1809_v23  ;;  %v1820_v27 = vmul.f32 %v1816_v24, %v1816_v24  ;;  %2537 = vmatpush3.msra.mxu0 %v2027_v12 }
 0xa91   :  { %2538 = vmatprep.subr.mxu0 %v2026_v13 }
 0xa92   :  { %v1817_v28 = vsub.f32 %v1795_v14, %v1813_v26  ;;  %v1828_v29 = vsel %vm95_vm0, %v1820_v27, 0.0  ;;  %2539 = vmatpush3.msra.mxu0 %v2026_v13  ;;  %v2025_v14 = vld [vmem:[%s3327_s12 + $0x58] sm:$0xff] }
 0xa93   :  { %1829 = vadd.xlane.f32.xlu0 %v1828_v29  ;;  %2540 = vmatprep.subr.mxu0 %v2025_v14 }
 0xa94   :  { %v1821_v30 = vmul.f32 %v1817_v28, %v1817_v28  ;;  %2541 = vmatpush3.msra.mxu0 %v2025_v14 }
 0xa95   :  { %2542 = vmatprep.subr.mxu0 %v2024_v15 }
 0xa96   :  { %v1831_v31 = vsel %vm95_vm0, %v1821_v30, 0.0  ;;  %2543 = vmatpush3.msra.mxu0 %v2024_v15 }
 0xa97   :  { %1832 = vadd.xlane.f32.xlu1 %v1831_v31  ;;  %2544 = vmatprep.subr.mxu0 %v2023_v16 }
 0xa98   :  { %2545 = vmatpush3.msra.mxu0 %v2023_v16 }
 0xa99   :  { %2546 = vmatprep.subr.mxu0 %v2022_v17 }
 0xa9a   :  { %2547 = vmatpush3.msra.mxu0 %v2022_v17 }
 0xa9b   :  { %2548 = vmatprep.subr.mxu0 %v2021_v18 }
 0xa9c   :  { %2549 = vmatpush3.msra.mxu0 %v2021_v18 }
 0xb16   :  { %v1827_v40 = vpop.xlane.xlu1 %1826 }
 0xb17   :  { %v1835_v41 = vmul.f32 0.03125, %v1827_v40 }
 0xb18   :  { %v1824_v42 = vpop.xlane.xlu0 %1823 }
 0xb19   :  { %v1839_v43 = vadd.f32 1e-05, %v1835_v41  ;;  %v1834_v44 = vmul.f32 0.03125, %v1824_v42 }
 0xb1b   :  { %2659 = vrsqrt.f32 %v1839_v43  ;;  %v1838_v45 = vadd.f32 1e-05, %v1834_v44 }
 0xb1c   :  { %v1830_v46 = vpop.xlane.xlu0 %1829 }
 0xb1d   :  { %2661 = vrsqrt.f32 %v1838_v45  ;;  %v1836_v47 = vmul.f32 0.03125, %v1830_v46 }
 0xb1f   :  { %v1840_v48 = vadd.f32 1e-05, %v1836_v47 }
 0xb20   :  { %v1833_v49 = vpop.xlane.xlu1 %1832 }
 0xb21   :  { %2663 = vrsqrt.f32 %v1840_v48  ;;  %v1837_v50 = vmul.f32 0.03125, %v1833_v49 }
 0xb23   :  { %v1841_v51 = vadd.f32 1e-05, %v1837_v50 }
 0xb25   :  { %2665 = vrsqrt.f32 %v1841_v51 }
 0xb28   :  { %v2660_v52 = vpop.eup %2659 }
 0xb29   :  { %v1847_v33 = vmul.f32 %v2660_v52, %v1815_v19  ;;  %v2020_v19 = vld [vmem:[%s3327_s12 + $0x30] sm:$0xff] }
 0xb2a   :  { %v2662_v53 = vpop.eup %2661  ;;  %2550 = vmatprep.subr.mxu0 %v2020_v19 }
 0xb2b   :  { %v1846_v35 = vmul.f32 %v2662_v53, %v1814_v21  ;;  %v1857_v54 = vmul.f32 %v2232_v34, %v1847_v33  ;;  %2551 = vmatpush3.msra.mxu0 %v2020_v19  ;;  %v2018_v21 = vld [vmem:[%s3327_s12 + $0x20] sm:$0xff] }
 0xb2c   :  { %2552 = vmatprep.subr.mxu0 %v2019_v20 }
 0xb2d   :  { %v1856_v57 = vmul.f32 %v2232_v34, %v1846_v35  ;;  %v1867_v62 = vadd.f32 %v2233_v56, %v1857_v54  ;;  %2553 = vmatpush3.msra.mxu0 %v2019_v20 }
 0xb2e   :  { %v2664_v58 = vpop.eup %2663  ;;  %2554 = vmatprep.subr.mxu0 %v2018_v21 }
 0xb2f   :  { %v1866_v59 = vadd.f32 %v2233_v56, %v1856_v57  ;;  %v1848_v61 = vmul.f32 %v2664_v58, %v1816_v24  ;;  %2555 = vmatpush3.msra.mxu0 %v2018_v21 }
 0xb30   :  { %2556 = vmatprep.subr.mxu0 %v2017_v22 }
 0xb31   :  { %2526 = vmatprep.mubr.msk.f32.mxu1 %vm95_vm0, %v1866_v59  ;;  %v1858_v63 = vmul.f32 %v2232_v34, %v1848_v61  ;;  %2557 = vmatpush3.msra.mxu0 %v2017_v22 }
 0xb32   :  { %v2666_v36 = vpop.eup %2665  ;;  %2527 = vmatmul.mubr.msk.f32.vlgmr.msra.gmra.mxu1 %vm95_vm0, %v1867_v62  ;;  %2558 = vmatprep.subr.mxu0 %v2016_v3 }
 0xb33   :  { %v1868_v0 = vadd.f32 %v2233_v56, %v1858_v63  ;;  %v1849_v2 = vmul.f32 %v2666_v36, %v1817_v28  ;;  %2559 = vmatpush3.msra.mxu0 %v2016_v3 }
 0xb34   :  { %2560 = vmatprep.subr.mxu0 %v2015_v6 }
 0xb35   :  { %2529 = vmatprep.mubr.msk.f32.mxu1 %vm95_vm0, %v1868_v0  ;;  %v1859_v5 = vmul.f32 %v2232_v34, %v1849_v2  ;;  %2561 = vmatpush3.msra.mxu0 %v2015_v6 }
 0xb36   :  { %2562 = vmatprep.subr.mxu0 %v2014_v1 }
 0xb37   :  { %v1869_v8 = vadd.f32 %v2233_v56, %v1859_v5  ;;  %2563 = vmatpush3.msra.mxu0 %v2014_v1 }
 0xb39   :  { %2530 = vmatmul.mubr.msk.f32.gmra.mxu1 %vm95_vm0, %v1869_v8 }
 0xbf2   :  { %v2528_v24 = vpop.f32.mrf.mxu1 }
 0xbf3   :  { %v1965_v25 = vadd.f32 %v2528_v24, %v2234_v7 }
 0xbf4   :  { %v1959_v23 = vpop.f32.mrf.mxu1 }
 0xbf5   :  { %v1983_v26 = vmul.f32 %v1965_v25, %v1965_v25  ;;  %v1960_v27 = vadd.f32 %v2234_v7, %v1959_v23  ;;  %v1979_v58 = vmul.f32 0.5, %v1965_v25 }
 0xbf7   :  { %v1987_v28 = vmul.f32 %v1983_v26, %v1965_v25  ;;  %v1982_v29 = vmul.f32 %v1960_v27, %v1960_v27  ;;  %v1978_v56 = vmul.f32 0.5, %v1960_v27 }
 0xbf9   :  { %v1991_v30 = vmul.f32 0.044715, %v1987_v28  ;;  %v1986_v31 = vmul.f32 %v1982_v29, %v1960_v27  ;;  %v2531_v32 = vpop.f32.mrf.mxu1 }
 0xbfa   :  { %v1975_v37 = vadd.f32 %v2531_v32, %v2234_v7 }
 0xbfb   :  { %v1995_v38 = vadd.f32 %v1991_v30, %v1965_v25  ;;  %v1990_v39 = vmul.f32 0.044715, %v1986_v31  ;;  %v1969_v40 = vpop.f32.mrf.mxu1 }
 0xbfc   :  { %v1985_v41 = vmul.f32 %v1975_v37, %v1975_v37  ;;  %v1970_v42 = vadd.f32 %v2234_v7, %v1969_v40  ;;  %v1981_v5 = vmul.f32 0.5, %v1975_v37 }
 0xbfd   :  { %v1999_v43 = vmul.f32 0.7978846, %v1995_v38  ;;  %v1994_v44 = vadd.f32 %v1990_v39, %v1960_v27 }
 0xbfe   :  { %v1989_v45 = vmul.f32 %v1985_v41, %v1975_v37  ;;  %v1984_v46 = vmul.f32 %v1970_v42, %v1970_v42  ;;  %v1980_v0 = vmul.f32 0.5, %v1970_v42 }
 0xbff   :  { %2667 = vtanh.f32 %v1999_v43  ;;  %v1998_v47 = vmul.f32 0.7978846, %v1994_v44 }
 0xc00   :  { %v1993_v48 = vmul.f32 0.044715, %v1989_v45  ;;  %v1988_v49 = vmul.f32 %v1984_v46, %v1970_v42 }
 0xc01   :  { %2669 = vtanh.f32 %v1998_v47 }
 0xc02   :  { %v1997_v50 = vadd.f32 %v1993_v48, %v1975_v37  ;;  %v1992_v51 = vmul.f32 0.044715, %v1988_v49 }
 0xc04   :  { %v2001_v52 = vmul.f32 0.7978846, %v1997_v50  ;;  %v1996_v33 = vadd.f32 %v1992_v51, %v1970_v42 }
 0xc06   :  { %v2000_v34 = vmul.f32 0.7978846, %v1996_v33  ;;  %2671 = vtanh.f32 %v2001_v52 }
 0xc08   :  { %2673 = vtanh.f32 %v2000_v34 }
 0xc0c   :  { %v2668_v53 = vpop.eup %2667 }
 0xc0d   :  { %v2007_v54 = vadd.f32 1.0, %v2668_v53 }
 0xc0e   :  { %v2670_v35 = vpop.eup %2669 }
 0xc0f   :  { %v2006_v57 = vadd.f32 1.0, %v2670_v35  ;;  %v2011_v61 = vmul.f32 %v2007_v54, %v1979_v58 }
 0xc11   :  { %v2010_v59 = vmul.f32 %v2006_v57, %v1978_v56 }
 0xc13   :  { %v2672_v62 = vpop.eup %2671  ;;  %2564 = vmatprep.mubr.f32.mxu0 %v2010_v59 }
 0xc14   :  { %2565 = vmatmul.mubr.f32.vlgmr.msra.gmra.mxu0 %v2011_v61  ;;  %v2009_v36 = vadd.f32 1.0, %v2672_v62 }
 0xc15   :  { %v2674_v63 = vpop.eup %2673 }
 0xc16   :  { %v2008_v2 = vadd.f32 1.0, %v2674_v63  ;;  %v2013_v10 = vmul.f32 %v2009_v36, %v1981_v5 }
 0xc18   :  { %v2012_v8 = vmul.f32 %v2008_v2, %v1980_v0 }
 0xc1a   :  { %2567 = vmatprep.mubr.f32.mxu0 %v2012_v8 }
 0xc1b   :  { %2568 = vmatmul.mubr.f32.gmra.mxu0 %v2013_v10 }
 0xcd4   :  { %v2566_v12 = vpop.f32.mrf.mxu0 }
 0xcd5   :  { %v2109_v13 = vadd.f32 %v2566_v12, %v2239_v11 }
 0xcd6   :  { %v2103_v14 = vpop.f32.mrf.mxu0 }
 0xcd7   :  { %v2123_v15 = vadd.f32 %v3208_v55, %v2109_v13  ;;  %v2104_v16 = vadd.f32 %v2239_v11, %v2103_v14 }
 0xcd9   :  { %2127 = vst.msk [vmem:[#allocation8 + $0x8] sm:$0xff] %vm95_vm0, %v2123_v15  ;;  %v2122_v17 = vadd.f32 %v3214_v60, %v2104_v16 }
 0xcdb   :  { %2126 = vst.msk [vmem:[#allocation8] sm:$0xff] %vm95_vm0, %v2122_v17  ;;  %v2569_v18 = vpop.f32.mrf.mxu0 }
 0xcdc   :  { %v2119_v19 = vadd.f32 %v2569_v18, %v2239_v11 }
 0xcdd   :  { %v2113_v20 = vpop.f32.mrf.mxu0 }
 0xcde   :  { %v2125_v21 = vadd.f32 %v3221_v4, %v2119_v19  ;;  %v2114_v22 = vadd.f32 %v2239_v11, %v2113_v20 }
 0xce0   :  { %2129 = vst.msk [vmem:[#allocation8 + $0x18] sm:$0xff] %vm95_vm0, %v2125_v21  ;;  %v2124_v3 = vadd.f32 %v3227_v9, %v2114_v22 }
 0xce2   :  { %2128 = vst.msk [vmem:[#allocation8 + $0x10] sm:$0xff] %vm95_vm0, %v2124_v3 }
 0xce3   :  { %2750 = shalt.err (!%p2747_p5)
}
 0xce4   :  { %2141 = dma.vmem_to_hbm [thread:$0]  %s2136_s5, 512, %s3329_s14, [#allocation4], %s2767_s18, %s2767_s18, %s2768_s19  }
 0xce5   :  { %2763 = dma.done.wait [#allocation4], 512  }
 0xce6   :  { %2764 = vsyncadd [#allocation4], 4294966784 }
 0xce7   :  { %2145 = vsyncpa [#allocation3], 1 }
 0xce8   :  { %2146 = vsyncpa [#allocation6], 1 }
 0xce9   :  { %2147 = vsyncpa [#allocation4], 1 }

</bundles_post_ra>
